<compile_context>
chip_gen: v5e
topology: v5e:2x2
jax: 0.10.0
libtpu: 0.0.40
codegen_flags: <defaults>
</compile_context>

<pallas_src>
import functools

import jax
import jax.numpy as jnp
from jax import lax
from jax.experimental import pallas as pl
from jax.experimental.pallas import tpu as pltpu


def _round_up(x, m):
    return ((x + m - 1) // m) * m


def _vmem_limit_bytes():
    # v5e/v6e have 128 MiB physical VMEM, v7x only 64 MiB.  Use ~75% of physical
    # (headroom for double-buffers / compiler scratch); fall back to a v7x-safe
    # 48 MiB if the query is unavailable.
    try:
        cap = pltpu.get_tpu_info().vmem_capacity_bytes
        return min(int(cap * 3 // 4), 100 * 1024 * 1024)
    except Exception:
        return 48 * 1024 * 1024


# ---------------------------------------------------------------------------
# Kernel 1: LSTM dual encoder (time-blocked recurrence + bilinear score)
# ---------------------------------------------------------------------------
def lstm_dual_encoder_kernel(x_ref, wih_ref, whh_ref, bias_ref, m_ref, b_ref,
                             out_ref, xw_ref, h_ref, c_ref, *,
                             seq_len, chunk_t, b_pad, h_pad, b_half,
                             needs_mask, unroll):
    """Shapes (padded):
      x_ref   : (Tc, Bp, Ep)   bf16  time-chunk block, time-major stacked batch
      wih_ref : (Ep, 4*Hp)     bf16  W_ih^T (gate blocks lane-padded), resident
      whh_ref : (Hp, 4*Hp)     bf16  W_hh^T, resident
      bias_ref: (1, 4*Hp)      f32   b_ih + b_hh
      m_ref   : (Hp, Hp)       f32   bilinear M
      b_ref   : (1,)           f32   bilinear bias (SMEM scalar)
      out_ref : (Bh, 128)      f32   lane-broadcast score (wrapper reads col 0)
      xw_ref  : (Tc*Bp, 4*Hp)  f32   scratch: per-chunk input projection
      h_ref/c_ref : (Bp, Hp)   f32   scratch: recurrent state carried across chunks
    """
    Tc, Bp, Hp, Bh = chunk_t, b_pad, h_pad, b_half
    ci = pl.program_id(0)

    @pl.when(ci == 0)
    def _():
        h_ref[...] = jnp.zeros_like(h_ref)
        c_ref[...] = jnp.zeros_like(c_ref)

    # Hoisted per-chunk input projection: one MXU matmul for all Tc steps,
    # bias folded in with a single broadcast.
    x_chunk = x_ref[...].reshape(Tc * Bp, x_ref.shape[-1])
    xw_ref[...] = (
        jnp.dot(x_chunk, wih_ref[...], preferred_element_type=jnp.float32)
        + bias_ref[...])

    def step(s, carry):
        h, c = carry
        row0 = pl.multiple_of(s * Bp, Bp)
        # W_hh re-read from VMEM each step (vld has slack) instead of being
        # pinned in vregs across the unrolled region.
        gates = xw_ref[pl.ds(row0, Bp), :] + jnp.dot(
            h.astype(jnp.bfloat16), whh_ref[...],
            preferred_element_type=jnp.float32)
        # sigmoid(z) = 0.5*tanh(0.5 z) + 0.5  -> one EUP op per gate.
        i_g = 0.5 * jnp.tanh(0.5 * gates[:, 0 * Hp:1 * Hp]) + 0.5
        f_g = 0.5 * jnp.tanh(0.5 * gates[:, 1 * Hp:2 * Hp]) + 0.5
        g_g = jnp.tanh(gates[:, 2 * Hp:3 * Hp])
        o_g = 0.5 * jnp.tanh(0.5 * gates[:, 3 * Hp:4 * Hp]) + 0.5
        c_new = f_g * c + i_g * g_g
        h_new = o_g * jnp.tanh(c_new)
        if needs_mask:  # static: only traced when T is not a multiple of Tc
            valid = (ci * Tc + s) < seq_len
            h_new = jnp.where(valid, h_new, h)
            c_new = jnp.where(valid, c_new, c)
        return h_new, c_new

    h_fin, c_fin = lax.fori_loop(0, Tc, step, (h_ref[...], c_ref[...]),
                                 unroll=unroll)
    h_ref[...] = h_fin
    c_ref[...] = c_fin

    # Bilinear score (c @ M) . r + b on the final hidden state, last chunk only.
    @pl.when(ci == pl.num_programs(0) - 1)
    def _():
        c_enc = h_fin[:Bh, :]           # x1 encodings (aligned half-split)
        r_enc = h_fin[Bh:, :]           # x2 encodings
        cm = jnp.dot(c_enc, m_ref[...], preferred_element_type=jnp.float32)
        score = jnp.sum(cm * r_enc, axis=-1, keepdims=True) + b_ref[0]
        # Lane-dense writeback: broadcast across 128 lanes -> unmasked vst.
        out_ref[...] = jnp.broadcast_to(score, out_ref.shape).astype(out_ref.dtype)


# ---------------------------------------------------------------------------
# Kernel 2: CrossConvNet (k=1) + final 3->1 linear combine, batch-tiled
# ---------------------------------------------------------------------------
def ccn_combine_kernel(y2_ref, y1t_ref, w1_ref, w2_ref, olstm_ref, scal_ref,
                       out_ref):
    """y2_ref : (bt, L, Ep)  bf16  x2 embeddings, time-padded
       y1t_ref: (bt, Ep, L)  bf16  x1 embeddings, pre-transposed in the wrapper
       w1_ref, w2_ref: (1, L) f32  fc1/fc2 weights
       olstm_ref: (bt, 1) f32  LSTM dual-encoder scores
       scal_ref : SMEM (6,) f32 = [b1, b2, wfc0, wfc1, wfc2, bfc]
       out_ref  : (bt, 128) f32 lane-broadcast final output (wrapper reads col 0)
    """
    # a[b, i, j] = <x2_emb[b, i, :], x1_emb[b, :, j]>  (batched MXU matmul, no
    # in-kernel operand transpose thanks to the wrapper-side layout).
    a = jnp.einsum('bie,bej->bij', y2_ref[...], y1t_ref[...],
                   preferred_element_type=jnp.float32)          # (bt, L, L)
    a_max = jnp.max(a, axis=1)                     # top-k with k=1 over x2 positions
    o1 = jnp.sum(a_max * w1_ref[...], axis=-1, keepdims=True) + scal_ref[0]
    o2 = jnp.sum(a_max * w2_ref[...], axis=-1, keepdims=True) + scal_ref[1]
    o = (scal_ref[2] * olstm_ref[...] + scal_ref[3] * o1 + scal_ref[4] * o2
         + scal_ref[5])
    out_ref[...] = jnp.broadcast_to(o, out_ref.shape).astype(out_ref.dtype)


# ---------------------------------------------------------------------------
# Wrapper
# ---------------------------------------------------------------------------
def ccn_lstm_forward(x1, x2, raw, max_seq_len, *, time_chunk=16, batch_tile=8):
    emb = raw["embedding"]                      # (V, E)
    w_ih, w_hh = raw["w_ih"], raw["w_hh"]       # (4H, E), (4H, H)
    b_ih, b_hh = raw["b_ih"], raw["b_hh"]       # (4H,)
    M, b = raw["M"], raw["b"]                   # (H, H), (1,)
    w1, b1 = raw["ccn_w1"], raw["ccn_b1"]       # (1, L), (1,)
    w2, b2 = raw["ccn_w2"], raw["ccn_b2"]
    wfc, bfc = raw["fc_w"], raw["fc_b"]         # (1, 3), (1,)

    B, T = x1.shape
    E = emb.shape[1]
    H = w_hh.shape[1]
    L = max_seq_len
    assert L >= T, "max_seq_len must be >= sequence length"

    # Padded sizes: lane-align H and E, sublane-align each batch half.
    Ep = _round_up(E, 128)
    Hp = _round_up(H, 128)
    Bh = _round_up(B, 8)
    Bp = 2 * Bh

    # Time blocking.
    Tc = max(1, min(time_chunk, T))
    n_chunks = pl.cdiv(T, Tc)
    T_pad = n_chunks * Tc
    needs_mask = (T_pad != T)

    vmem_limit = _vmem_limit_bytes()

    # ---- pack LSTM params into the padded / pre-transposed kernel layout ----
    def pad_gate_cols(w_t, rows, rdim):
        # w_t: (rdim, 4H) -> (rows, 4*Hp) with each gate block lane-padded to Hp.
        out = jnp.zeros((rows, 4 * Hp), jnp.float32)
        for g in range(4):
            out = out.at[:rdim, g * Hp:g * Hp + H].set(w_t[:, g * H:(g + 1) * H])
        return out

    wih_t = pad_gate_cols(w_ih.T, Ep, E)                               # (Ep, 4Hp)
    whh_t = pad_gate_cols(w_hh.T, Hp, H)                               # (Hp, 4Hp)
    bias = pad_gate_cols((b_ih + b_hh).reshape(1, 4 * H), 1, 1)        # (1, 4Hp)
    m_pad = jnp.zeros((Hp, Hp), jnp.float32).at[:H, :H].set(M)

    # ---- embedding lookup (gather glue), lane-padded E; emb_drop = identity --
    emb_p = jnp.zeros((emb.shape[0], Ep), jnp.float32).at[:, :E].set(emb)
    x1e = emb_p[x1]                   # (B, T, Ep)  for the CCN kernel
    x2e = emb_p[x2]
    # Time-major activations for the LSTM come from gathering with transposed
    # indices (cheap index transpose, no big activation transpose in the wrapper).
    x1e_tm = emb_p[x1.T]              # (T, B, Ep)
    x2e_tm = emb_p[x2.T]

    x_tm = jnp.zeros((T_pad, Bp, Ep), jnp.float32)
    x_tm = x_tm.at[:T, :B].set(x1e_tm).at[:T, Bh:Bh + B].set(x2e_tm)
    x_tm = x_tm.astype(jnp.bfloat16)

    smem = pl.BlockSpec(memory_space=pltpu.MemorySpace.SMEM)

    lstm_kernel = functools.partial(
        lstm_dual_encoder_kernel,
        seq_len=T, chunk_t=Tc, b_pad=Bp, h_pad=Hp, b_half=Bh,
        needs_mask=needs_mask, unroll=min(8, Tc))

    lstm_out = pl.pallas_call(
        lstm_kernel,
        out_shape=jax.ShapeDtypeStruct((Bh, 128), jnp.float32),
        grid_spec=pltpu.PrefetchScalarGridSpec(
            num_scalar_prefetch=0,
            grid=(n_chunks,),
            in_specs=[
                pl.BlockSpec((Tc, Bp, Ep), lambda c: (c, 0, 0)),     # x chunk
                pl.BlockSpec((Ep, 4 * Hp), lambda c: (0, 0)),        # W_ih^T
                pl.BlockSpec((Hp, 4 * Hp), lambda c: (0, 0)),        # W_hh^T
                pl.BlockSpec((1, 4 * Hp), lambda c: (0, 0)),         # bias
                pl.BlockSpec((Hp, Hp), lambda c: (0, 0)),            # M
                smem,                                                # b
            ],
            out_specs=pl.BlockSpec((Bh, 128), lambda c: (0, 0)),
            scratch_shapes=[
                pltpu.VMEM((Tc * Bp, 4 * Hp), jnp.float32),   # per-chunk xW
                pltpu.VMEM((Bp, Hp), jnp.float32),            # h carry
                pltpu.VMEM((Bp, Hp), jnp.float32),            # c carry
            ]),
        compiler_params=pltpu.CompilerParams(
            dimension_semantics=("arbitrary",),
            vmem_limit_bytes=vmem_limit),
    )(x_tm,
      wih_t.astype(jnp.bfloat16),
      whh_t.astype(jnp.bfloat16),
      bias, m_pad, b)
    o_lstm = lstm_out[:B, 0]                      # (B,) valid rows, lane 0

    # ---- CrossConvNet kernel inputs: batch-tiled, bf16, x1 pre-transposed ----
    bt = batch_tile
    Bt = _round_up(B, bt)
    y2b = jnp.zeros((Bt, L, Ep), jnp.float32).at[:B, :T, :].set(x2e)
    y2b = y2b.astype(jnp.bfloat16)
    y1t = jnp.zeros((Bt, Ep, L), jnp.float32).at[:B, :, :T].set(
        jnp.transpose(x1e, (0, 2, 1)))
    y1t = y1t.astype(jnp.bfloat16)
    olstm_col = jnp.zeros((Bt, 1), jnp.float32).at[:B, 0].set(o_lstm)
    scal = jnp.concatenate([b1, b2, wfc.reshape(-1), bfc]).astype(jnp.float32)

    out = pl.pallas_call(
        ccn_combine_kernel,
        out_shape=jax.ShapeDtypeStruct((Bt, 128), jnp.float32),
        grid_spec=pltpu.PrefetchScalarGridSpec(
            num_scalar_prefetch=0,
            grid=(Bt // bt,),
            in_specs=[
                pl.BlockSpec((bt, L, Ep), lambda i: (i, 0, 0)),   # x2 emb
                pl.BlockSpec((bt, Ep, L), lambda i: (i, 0, 0)),   # x1 emb^T
                pl.BlockSpec((1, L), lambda i: (0, 0)),           # fc1 weight
                pl.BlockSpec((1, L), lambda i: (0, 0)),           # fc2 weight
                pl.BlockSpec((bt, 1), lambda i: (i, 0)),          # o_lstm
                smem,                                             # scalars
            ],
            out_specs=pl.BlockSpec((bt, 128), lambda i: (i, 0))),
        compiler_params=pltpu.CompilerParams(
            dimension_semantics=("parallel",),
            vmem_limit_bytes=vmem_limit),
    )(y2b, y1t, w1.astype(jnp.float32), w2.astype(jnp.float32), olstm_col, scal)
    return out[:B, 0]


# ---------------------------------------------------------------------------
# Parameter init (mirrors PyTorch defaults + init_params_)
# ---------------------------------------------------------------------------
def init_raw_params(key, n_vocab, emb_dim, h_dim, max_seq_len, k_top=1, pad_idx=0):
    (k_emb, k_wih, k_whh, k_bih, k_bhh, k_m,
     k_w1, k_b1, k_w2, k_b2, k_fcw, k_fcb) = jax.random.split(key, 12)

    embedding = jax.random.normal(k_emb, (n_vocab, emb_dim), jnp.float32)
    embedding = embedding.at[pad_idx].set(0.0)

    s = 1.0 / jnp.sqrt(jnp.float32(h_dim))
    w_ih = jax.random.uniform(k_wih, (4 * h_dim, emb_dim), jnp.float32, -s, s)
    w_hh = jax.random.uniform(k_whh, (4 * h_dim, h_dim), jnp.float32, -s, s)
    b_ih = jax.random.uniform(k_bih, (4 * h_dim,), jnp.float32, -s, s)
    b_hh = jax.random.uniform(k_bhh, (4 * h_dim,), jnp.float32, -s, s)
    b_ih = b_ih.at[h_dim:2 * h_dim].set(2.0)   # init_params_: forget-gate bias = 2
    b_hh = b_hh.at[h_dim:2 * h_dim].set(2.0)

    M = jnp.sqrt(2.0 / (h_dim + h_dim)) * jax.random.normal(
        k_m, (h_dim, h_dim), jnp.float32)
    b = jnp.zeros((1,), jnp.float32)

    Lk = max_seq_len * k_top
    sl = 1.0 / jnp.sqrt(jnp.float32(Lk))
    ccn_w1 = jax.random.uniform(k_w1, (1, Lk), jnp.float32, -sl, sl)
    ccn_b1 = jax.random.uniform(k_b1, (1,), jnp.float32, -sl, sl)
    ccn_w2 = jax.random.uniform(k_w2, (1, Lk), jnp.float32, -sl, sl)
    ccn_b2 = jax.random.uniform(k_b2, (1,), jnp.float32, -sl, sl)

    sf = 1.0 / jnp.sqrt(jnp.float32(3.0))
    fc_w = jax.random.uniform(k_fcw, (1, 3), jnp.float32, -sf, sf)
    fc_b = jax.random.uniform(k_fcb, (1,), jnp.float32, -sf, sf)

    return dict(embedding=embedding, w_ih=w_ih, w_hh=w_hh, b_ih=b_ih, b_hh=b_hh,
                M=M, b=b, ccn_w1=ccn_w1, ccn_b1=ccn_b1, ccn_w2=ccn_w2,
                ccn_b2=ccn_b2, fc_w=fc_w, fc_b=fc_b)


# ---------------------------------------------------------------------------
# Pure-JAX f32 reference of the full CCN_LSTM forward (for the sanity check)
# ---------------------------------------------------------------------------
def reference_forward(x1, x2, raw, max_seq_len):
    emb = raw["embedding"]
    w_ih, w_hh = raw["w_ih"], raw["w_hh"]
    bias = raw["b_ih"] + raw["b_hh"]
    M, bb = raw["M"], raw["b"][0]
    H = w_hh.shape[1]
    B, T = x1.shape
    L = max_seq_len

    def run_lstm(xe):  # (B, T, E)
        h = jnp.zeros((B, H), jnp.float32)
        c = jnp.zeros((B, H), jnp.float32)
        for t in range(T):
            g = xe[:, t, :] @ w_ih.T + h @ w_hh.T + bias
            i = jax.nn.sigmoid(g[:, :H])
            f = jax.nn.sigmoid(g[:, H:2 * H])
            gg = jnp.tanh(g[:, 2 * H:3 * H])
            o = jax.nn.sigmoid(g[:, 3 * H:])
            c = f * c + i * gg
            h = o * jnp.tanh(c)
        return h

    x1e = emb[x1]
    x2e = emb[x2]
    c_enc = run_lstm(x1e)
    r_enc = run_lstm(x2e)
    o_lstm = jnp.sum((c_enc @ M) * r_enc, axis=-1) + bb            # (B,)

    y1 = jnp.pad(x1e, ((0, 0), (0, L - T), (0, 0)))                # (B, L, E)
    y2 = jnp.pad(x2e, ((0, 0), (0, L - T), (0, 0)))
    a = jnp.einsum('bie,bje->bij', y2, y1)
    a_max = jnp.max(a, axis=1)                                     # top-k, k=1
    o1 = a_max @ raw["ccn_w1"][0] + raw["ccn_b1"][0]               # (B,)
    o2 = a_max @ raw["ccn_w2"][0] + raw["ccn_b2"][0]

    feats = jnp.stack([o_lstm, o1, o2], axis=1)                    # (B, 3)
    return feats @ raw["fc_w"][0] + raw["fc_b"][0]                 # (B,)


if __name__ == "__main__":
    n_vocab, emb_dim, h_dim = 50, 16, 32
    batch, seq_len, max_seq_len = 2, 8, 16

    key = jax.random.PRNGKey(0)
    k_params, k_x1, k_x2 = jax.random.split(key, 3)
    raw = init_raw_params(k_params, n_vocab, emb_dim, h_dim, max_seq_len)

    x1 = jax.random.randint(k_x1, (batch, seq_len), 1, n_vocab, jnp.int32)
    x2 = jax.random.randint(k_x2, (batch, seq_len), 1, n_vocab, jnp.int32)

    # time_chunk=4 -> two time chunks at T=8, exercising the grid-carried h/c.
    out = ccn_lstm_forward(x1, x2, raw, max_seq_len, time_chunk=4)
    out = jax.block_until_ready(out)

    ref = reference_forward(x1, x2, raw, max_seq_len)
    assert out.shape == (batch,)
    # bf16 MXU inputs in both kernels (f32 accumulation) -> loosened tolerance
    # vs the pure-f32 reference.
    assert jnp.allclose(out, ref, atol=1e-1, rtol=1e-1), (out, ref)

    print("KERNEL_OK")
</pallas_src>

<mosaic_0001>
module attributes {stable_mosaic.version = 11 : i64} {
  func.func @lstm_dual_encoder_kernel(%arg0: i32, %arg1: memref<4x16x128xbf16, #tpu.memory_space<vmem>>, %arg2: memref<128x512xbf16, #tpu.memory_space<vmem>>, %arg3: memref<128x512xbf16, #tpu.memory_space<vmem>>, %arg4: memref<1x512xf32, #tpu.memory_space<vmem>>, %arg5: memref<128x128xf32, #tpu.memory_space<vmem>>, %arg6: memref<1xf32, #tpu.memory_space<smem>>, %arg7: memref<8x128xf32, #tpu.memory_space<vmem>>, %arg8: memref<64x512xf32, #tpu.memory_space<vmem>>, %arg9: memref<16x128xf32, #tpu.memory_space<vmem>>, %arg10: memref<16x128xf32, #tpu.memory_space<vmem>>) attributes {dimension_semantics = [#tpu.dimension_semantics<arbitrary>], iteration_bounds = array<i64: 2>, scalar_prefetch = 0 : i64, scratch_operands = 3 : i64, tpu.core_type = #tpu.core_type<tc>, window_params = [{transform_indices = @transform_0, window_bounds = array<i64: 4, 16, 128>}, {pipeline_mode = #tpu.pipeline_mode<synchronous>, transform_indices = @transform_1, window_bounds = array<i64: 128, 512>}, {pipeline_mode = #tpu.pipeline_mode<synchronous>, transform_indices = @transform_2, window_bounds = array<i64: 128, 512>}, {pipeline_mode = #tpu.pipeline_mode<synchronous>, transform_indices = @transform_3, window_bounds = array<i64: 1, 512>}, {pipeline_mode = #tpu.pipeline_mode<synchronous>, transform_indices = @transform_4, window_bounds = array<i64: 128, 128>}, {transform_indices = @transform_5, window_bounds = array<i64: 1>}, {pipeline_mode = #tpu.pipeline_mode<synchronous>, transform_indices = @transform_6, window_bounds = array<i64: 8, 128>}]} {
    %c0_i32 = arith.constant 0 : i32
    %0 = arith.cmpi eq, %arg0, %c0_i32 : i32
    %1 = arith.extui %0 : i1 to i32
    %c0_i32_0 = arith.constant 0 : i32
    %2 = arith.cmpi ne, %1, %c0_i32_0 : i32
    scf.if %2 {
      %cst_75 = arith.constant 0.000000e+00 : f32
      %174 = vector.broadcast %cst_75 : f32 to vector<16x128xf32>
      %c0_76 = arith.constant 0 : index
      %c0_77 = arith.constant 0 : index
      %175 = vector.load %arg9[%c0_76, %c0_77] : memref<16x128xf32, #tpu.memory_space<vmem>>, vector<16x128xf32>
      tpu.vector_store %arg9[%c0_76, %c0_77], %174 {strides = array<i32>} : memref<16x128xf32, #tpu.memory_space<vmem>>, vector<16x128xf32>,
      %cst_78 = arith.constant 0.000000e+00 : f32
      %176 = vector.broadcast %cst_78 : f32 to vector<16x128xf32>
      %c0_79 = arith.constant 0 : index
      %c0_80 = arith.constant 0 : index
      %177 = vector.load %arg10[%c0_79, %c0_80] : memref<16x128xf32, #tpu.memory_space<vmem>>, vector<16x128xf32>
      tpu.vector_store %arg10[%c0_79, %c0_80], %176 {strides = array<i32>} : memref<16x128xf32, #tpu.memory_space<vmem>>, vector<16x128xf32>,
    } else {
    }
    %c0 = arith.constant 0 : index
    %c0_1 = arith.constant 0 : index
    %c0_2 = arith.constant 0 : index
    %3 = vector.load %arg1[%c0, %c0_1, %c0_2] : memref<4x16x128xbf16, #tpu.memory_space<vmem>>, vector<4x16x128xbf16>
    %4 = vector.shape_cast %3 : vector<4x16x128xbf16> to vector<64x128xbf16>
    %c0_3 = arith.constant 0 : index
    %c0_4 = arith.constant 0 : index
    %5 = vector.load %arg2[%c0_3, %c0_4] : memref<128x512xbf16, #tpu.memory_space<vmem>>, vector<128x512xbf16>
    %cst = arith.constant dense<0.000000e+00> : vector<64x512xf32>
    %6 = tpu.matmul %4, %5, %cst {dimension_numbers = #tpu.dot_dimension_numbers<[1], [0], [0], [1], [0, 0, 1, 1], [], []>} : vector<64x128xbf16>, vector<128x512xbf16>, vector<64x512xf32> -> vector<64x512xf32>
    %c0_5 = arith.constant 0 : index
    %c0_6 = arith.constant 0 : index
    %7 = vector.load %arg4[%c0_5, %c0_6] : memref<1x512xf32, #tpu.memory_space<vmem>>, vector<1x512xf32>
    %8 = vector.broadcast %7 : vector<1x512xf32> to vector<64x512xf32>
    %9 = arith.addf %6, %8 : vector<64x512xf32>
    %c0_7 = arith.constant 0 : index
    %c0_8 = arith.constant 0 : index
    %10 = vector.load %arg8[%c0_7, %c0_8] : memref<64x512xf32, #tpu.memory_space<vmem>>, vector<64x512xf32>
    tpu.vector_store %arg8[%c0_7, %c0_8], %9 {strides = array<i32>} : memref<64x512xf32, #tpu.memory_space<vmem>>, vector<64x512xf32>,
    %c0_9 = arith.constant 0 : index
    %c0_10 = arith.constant 0 : index
    %11 = vector.load %arg9[%c0_9, %c0_10] : memref<16x128xf32, #tpu.memory_space<vmem>>, vector<16x128xf32>
    %c0_11 = arith.constant 0 : index
    %c0_12 = arith.constant 0 : index
    %12 = vector.load %arg10[%c0_11, %c0_12] : memref<16x128xf32, #tpu.memory_space<vmem>>, vector<16x128xf32>
    %c0_i32_13 = arith.constant 0 : i32
    %c16_i32 = arith.constant 16 : i32
    %13 = arith.muli %c0_i32_13, %c16_i32 : i32
    %14 = tpu.assume_multiple %13, 16 : i32
    %15 = arith.index_cast %14 : i32 to index
    %c0_14 = arith.constant 0 : index
    %16 = vector.load %arg8[%15, %c0_14] : memref<64x512xf32, #tpu.memory_space<vmem>>, vector<16x512xf32>
    %17 = arith.truncf %11 : vector<16x128xf32> to vector<16x128xbf16>
    %c0_15 = arith.constant 0 : index
    %c0_16 = arith.constant 0 : index
    %18 = vector.load %arg3[%c0_15, %c0_16] : memref<128x512xbf16, #tpu.memory_space<vmem>>, vector<128x512xbf16>
    %cst_17 = arith.constant dense<0.000000e+00> : vector<16x512xf32>
    %19 = tpu.matmul %17, %18, %cst_17 {dimension_numbers = #tpu.dot_dimension_numbers<[1], [0], [0], [1], [0, 0, 1, 1], [], []>} : vector<16x128xbf16>, vector<128x512xbf16>, vector<16x512xf32> -> vector<16x512xf32>
    %20 = arith.addf %16, %19 : vector<16x512xf32>
    %21 = vector.extract_strided_slice %20 {offsets = [0, 0], sizes = [16, 128], strides = [1, 1]} : vector<16x512xf32> to vector<16x128xf32>
    %cst_18 = arith.constant 5.000000e-01 : f32
    %22 = vector.broadcast %cst_18 : f32 to vector<16x128xf32>
    %23 = arith.mulf %22, %21 : vector<16x128xf32>
    %24 = math.tanh %23 : vector<16x128xf32>
    %cst_19 = arith.constant 5.000000e-01 : f32
    %25 = vector.broadcast %cst_19 : f32 to vector<16x128xf32>
    %26 = arith.mulf %25, %24 : vector<16x128xf32>
    %cst_20 = arith.constant 5.000000e-01 : f32
    %27 = vector.broadcast %cst_20 : f32 to vector<16x128xf32>
    %28 = arith.addf %26, %27 : vector<16x128xf32>
    %29 = vector.extract_strided_slice %20 {offsets = [0, 128], sizes = [16, 128], strides = [1, 1]} : vector<16x512xf32> to vector<16x128xf32>
    %cst_21 = arith.constant 5.000000e-01 : f32
    %30 = vector.broadcast %cst_21 : f32 to vector<16x128xf32>
    %31 = arith.mulf %30, %29 : vector<16x128xf32>
    %32 = math.tanh %31 : vector<16x128xf32>
    %cst_22 = arith.constant 5.000000e-01 : f32
    %33 = vector.broadcast %cst_22 : f32 to vector<16x128xf32>
    %34 = arith.mulf %33, %32 : vector<16x128xf32>
    %cst_23 = arith.constant 5.000000e-01 : f32
    %35 = vector.broadcast %cst_23 : f32 to vector<16x128xf32>
    %36 = arith.addf %34, %35 : vector<16x128xf32>
    %37 = vector.extract_strided_slice %20 {offsets = [0, 256], sizes = [16, 128], strides = [1, 1]} : vector<16x512xf32> to vector<16x128xf32>
    %38 = math.tanh %37 : vector<16x128xf32>
    %39 = vector.extract_strided_slice %20 {offsets = [0, 384], sizes = [16, 128], strides = [1, 1]} : vector<16x512xf32> to vector<16x128xf32>
    %cst_24 = arith.constant 5.000000e-01 : f32
    %40 = vector.broadcast %cst_24 : f32 to vector<16x128xf32>
    %41 = arith.mulf %40, %39 : vector<16x128xf32>
    %42 = math.tanh %41 : vector<16x128xf32>
    %cst_25 = arith.constant 5.000000e-01 : f32
    %43 = vector.broadcast %cst_25 : f32 to vector<16x128xf32>
    %44 = arith.mulf %43, %42 : vector<16x128xf32>
    %cst_26 = arith.constant 5.000000e-01 : f32
    %45 = vector.broadcast %cst_26 : f32 to vector<16x128xf32>
    %46 = arith.addf %44, %45 : vector<16x128xf32>
    %47 = arith.mulf %36, %12 : vector<16x128xf32>
    %48 = arith.mulf %28, %38 : vector<16x128xf32>
    %49 = arith.addf %47, %48 : vector<16x128xf32>
    %50 = math.tanh %49 : vector<16x128xf32>
    %51 = arith.mulf %46, %50 : vector<16x128xf32>
    %c1_i32 = arith.constant 1 : i32
    %c16_i32_27 = arith.constant 16 : i32
    %52 = arith.muli %c1_i32, %c16_i32_27 : i32
    %53 = tpu.assume_multiple %52, 16 : i32
    %54 = arith.index_cast %53 : i32 to index
    %c0_28 = arith.constant 0 : index
    %55 = vector.load %arg8[%54, %c0_28] : memref<64x512xf32, #tpu.memory_space<vmem>>, vector<16x512xf32>
    %56 = arith.truncf %51 : vector<16x128xf32> to vector<16x128xbf16>
    %c0_29 = arith.constant 0 : index
    %c0_30 = arith.constant 0 : index
    %57 = vector.load %arg3[%c0_29, %c0_30] : memref<128x512xbf16, #tpu.memory_space<vmem>>, vector<128x512xbf16>
    %cst_31 = arith.constant dense<0.000000e+00> : vector<16x512xf32>
    %58 = tpu.matmul %56, %57, %cst_31 {dimension_numbers = #tpu.dot_dimension_numbers<[1], [0], [0], [1], [0, 0, 1, 1], [], []>} : vector<16x128xbf16>, vector<128x512xbf16>, vector<16x512xf32> -> vector<16x512xf32>
    %59 = arith.addf %55, %58 : vector<16x512xf32>
    %60 = vector.extract_strided_slice %59 {offsets = [0, 0], sizes = [16, 128], strides = [1, 1]} : vector<16x512xf32> to vector<16x128xf32>
    %cst_32 = arith.constant 5.000000e-01 : f32
    %61 = vector.broadcast %cst_32 : f32 to vector<16x128xf32>
    %62 = arith.mulf %61, %60 : vector<16x128xf32>
    %63 = math.tanh %62 : vector<16x128xf32>
    %cst_33 = arith.constant 5.000000e-01 : f32
    %64 = vector.broadcast %cst_33 : f32 to vector<16x128xf32>
    %65 = arith.mulf %64, %63 : vector<16x128xf32>
    %cst_34 = arith.constant 5.000000e-01 : f32
    %66 = vector.broadcast %cst_34 : f32 to vector<16x128xf32>
    %67 = arith.addf %65, %66 : vector<16x128xf32>
    %68 = vector.extract_strided_slice %59 {offsets = [0, 128], sizes = [16, 128], strides = [1, 1]} : vector<16x512xf32> to vector<16x128xf32>
    %cst_35 = arith.constant 5.000000e-01 : f32
    %69 = vector.broadcast %cst_35 : f32 to vector<16x128xf32>
    %70 = arith.mulf %69, %68 : vector<16x128xf32>
    %71 = math.tanh %70 : vector<16x128xf32>
    %cst_36 = arith.constant 5.000000e-01 : f32
    %72 = vector.broadcast %cst_36 : f32 to vector<16x128xf32>
    %73 = arith.mulf %72, %71 : vector<16x128xf32>
    %cst_37 = arith.constant 5.000000e-01 : f32
    %74 = vector.broadcast %cst_37 : f32 to vector<16x128xf32>
    %75 = arith.addf %73, %74 : vector<16x128xf32>
    %76 = vector.extract_strided_slice %59 {offsets = [0, 256], sizes = [16, 128], strides = [1, 1]} : vector<16x512xf32> to vector<16x128xf32>
    %77 = math.tanh %76 : vector<16x128xf32>
    %78 = vector.extract_strided_slice %59 {offsets = [0, 384], sizes = [16, 128], strides = [1, 1]} : vector<16x512xf32> to vector<16x128xf32>
    %cst_38 = arith.constant 5.000000e-01 : f32
    %79 = vector.broadcast %cst_38 : f32 to vector<16x128xf32>
    %80 = arith.mulf %79, %78 : vector<16x128xf32>
    %81 = math.tanh %80 : vector<16x128xf32>
    %cst_39 = arith.constant 5.000000e-01 : f32
    %82 = vector.broadcast %cst_39 : f32 to vector<16x128xf32>
    %83 = arith.mulf %82, %81 : vector<16x128xf32>
    %cst_40 = arith.constant 5.000000e-01 : f32
    %84 = vector.broadcast %cst_40 : f32 to vector<16x128xf32>
    %85 = arith.addf %83, %84 : vector<16x128xf32>
    %86 = arith.mulf %75, %49 : vector<16x128xf32>
    %87 = arith.mulf %67, %77 : vector<16x128xf32>
    %88 = arith.addf %86, %87 : vector<16x128xf32>
    %89 = math.tanh %88 : vector<16x128xf32>
    %90 = arith.mulf %85, %89 : vector<16x128xf32>
    %c2_i32 = arith.constant 2 : i32
    %c16_i32_41 = arith.constant 16 : i32
    %91 = arith.muli %c2_i32, %c16_i32_41 : i32
    %92 = tpu.assume_multiple %91, 16 : i32
    %93 = arith.index_cast %92 : i32 to index
    %c0_42 = arith.constant 0 : index
    %94 = vector.load %arg8[%93, %c0_42] : memref<64x512xf32, #tpu.memory_space<vmem>>, vector<16x512xf32>
    %95 = arith.truncf %90 : vector<16x128xf32> to vector<16x128xbf16>
    %c0_43 = arith.constant 0 : index
    %c0_44 = arith.constant 0 : index
    %96 = vector.load %arg3[%c0_43, %c0_44] : memref<128x512xbf16, #tpu.memory_space<vmem>>, vector<128x512xbf16>
    %cst_45 = arith.constant dense<0.000000e+00> : vector<16x512xf32>
    %97 = tpu.matmul %95, %96, %cst_45 {dimension_numbers = #tpu.dot_dimension_numbers<[1], [0], [0], [1], [0, 0, 1, 1], [], []>} : vector<16x128xbf16>, vector<128x512xbf16>, vector<16x512xf32> -> vector<16x512xf32>
    %98 = arith.addf %94, %97 : vector<16x512xf32>
    %99 = vector.extract_strided_slice %98 {offsets = [0, 0], sizes = [16, 128], strides = [1, 1]} : vector<16x512xf32> to vector<16x128xf32>
    %cst_46 = arith.constant 5.000000e-01 : f32
    %100 = vector.broadcast %cst_46 : f32 to vector<16x128xf32>
    %101 = arith.mulf %100, %99 : vector<16x128xf32>
    %102 = math.tanh %101 : vector<16x128xf32>
    %cst_47 = arith.constant 5.000000e-01 : f32
    %103 = vector.broadcast %cst_47 : f32 to vector<16x128xf32>
    %104 = arith.mulf %103, %102 : vector<16x128xf32>
    %cst_48 = arith.constant 5.000000e-01 : f32
    %105 = vector.broadcast %cst_48 : f32 to vector<16x128xf32>
    %106 = arith.addf %104, %105 : vector<16x128xf32>
    %107 = vector.extract_strided_slice %98 {offsets = [0, 128], sizes = [16, 128], strides = [1, 1]} : vector<16x512xf32> to vector<16x128xf32>
    %cst_49 = arith.constant 5.000000e-01 : f32
    %108 = vector.broadcast %cst_49 : f32 to vector<16x128xf32>
    %109 = arith.mulf %108, %107 : vector<16x128xf32>
    %110 = math.tanh %109 : vector<16x128xf32>
    %cst_50 = arith.constant 5.000000e-01 : f32
    %111 = vector.broadcast %cst_50 : f32 to vector<16x128xf32>
    %112 = arith.mulf %111, %110 : vector<16x128xf32>
    %cst_51 = arith.constant 5.000000e-01 : f32
    %113 = vector.broadcast %cst_51 : f32 to vector<16x128xf32>
    %114 = arith.addf %112, %113 : vector<16x128xf32>
    %115 = vector.extract_strided_slice %98 {offsets = [0, 256], sizes = [16, 128], strides = [1, 1]} : vector<16x512xf32> to vector<16x128xf32>
    %116 = math.tanh %115 : vector<16x128xf32>
    %117 = vector.extract_strided_slice %98 {offsets = [0, 384], sizes = [16, 128], strides = [1, 1]} : vector<16x512xf32> to vector<16x128xf32>
    %cst_52 = arith.constant 5.000000e-01 : f32
    %118 = vector.broadcast %cst_52 : f32 to vector<16x128xf32>
    %119 = arith.mulf %118, %117 : vector<16x128xf32>
    %120 = math.tanh %119 : vector<16x128xf32>
    %cst_53 = arith.constant 5.000000e-01 : f32
    %121 = vector.broadcast %cst_53 : f32 to vector<16x128xf32>
    %122 = arith.mulf %121, %120 : vector<16x128xf32>
    %cst_54 = arith.constant 5.000000e-01 : f32
    %123 = vector.broadcast %cst_54 : f32 to vector<16x128xf32>
    %124 = arith.addf %122, %123 : vector<16x128xf32>
    %125 = arith.mulf %114, %88 : vector<16x128xf32>
    %126 = arith.mulf %106, %116 : vector<16x128xf32>
    %127 = arith.addf %125, %126 : vector<16x128xf32>
    %128 = math.tanh %127 : vector<16x128xf32>
    %129 = arith.mulf %124, %128 : vector<16x128xf32>
    %c3_i32 = arith.constant 3 : i32
    %c16_i32_55 = arith.constant 16 : i32
    %130 = arith.muli %c3_i32, %c16_i32_55 : i32
    %131 = tpu.assume_multiple %130, 16 : i32
    %132 = arith.index_cast %131 : i32 to index
    %c0_56 = arith.constant 0 : index
    %133 = vector.load %arg8[%132, %c0_56] : memref<64x512xf32, #tpu.memory_space<vmem>>, vector<16x512xf32>
    %134 = arith.truncf %129 : vector<16x128xf32> to vector<16x128xbf16>
    %c0_57 = arith.constant 0 : index
    %c0_58 = arith.constant 0 : index
    %135 = vector.load %arg3[%c0_57, %c0_58] : memref<128x512xbf16, #tpu.memory_space<vmem>>, vector<128x512xbf16>
    %cst_59 = arith.constant dense<0.000000e+00> : vector<16x512xf32>
    %136 = tpu.matmul %134, %135, %cst_59 {dimension_numbers = #tpu.dot_dimension_numbers<[1], [0], [0], [1], [0, 0, 1, 1], [], []>} : vector<16x128xbf16>, vector<128x512xbf16>, vector<16x512xf32> -> vector<16x512xf32>
    %137 = arith.addf %133, %136 : vector<16x512xf32>
    %138 = vector.extract_strided_slice %137 {offsets = [0, 0], sizes = [16, 128], strides = [1, 1]} : vector<16x512xf32> to vector<16x128xf32>
    %cst_60 = arith.constant 5.000000e-01 : f32
    %139 = vector.broadcast %cst_60 : f32 to vector<16x128xf32>
    %140 = arith.mulf %139, %138 : vector<16x128xf32>
    %141 = math.tanh %140 : vector<16x128xf32>
    %cst_61 = arith.constant 5.000000e-01 : f32
    %142 = vector.broadcast %cst_61 : f32 to vector<16x128xf32>
    %143 = arith.mulf %142, %141 : vector<16x128xf32>
    %cst_62 = arith.constant 5.000000e-01 : f32
    %144 = vector.broadcast %cst_62 : f32 to vector<16x128xf32>
    %145 = arith.addf %143, %144 : vector<16x128xf32>
    %146 = vector.extract_strided_slice %137 {offsets = [0, 128], sizes = [16, 128], strides = [1, 1]} : vector<16x512xf32> to vector<16x128xf32>
    %cst_63 = arith.constant 5.000000e-01 : f32
    %147 = vector.broadcast %cst_63 : f32 to vector<16x128xf32>
    %148 = arith.mulf %147, %146 : vector<16x128xf32>
    %149 = math.tanh %148 : vector<16x128xf32>
    %cst_64 = arith.constant 5.000000e-01 : f32
    %150 = vector.broadcast %cst_64 : f32 to vector<16x128xf32>
    %151 = arith.mulf %150, %149 : vector<16x128xf32>
    %cst_65 = arith.constant 5.000000e-01 : f32
    %152 = vector.broadcast %cst_65 : f32 to vector<16x128xf32>
    %153 = arith.addf %151, %152 : vector<16x128xf32>
    %154 = vector.extract_strided_slice %137 {offsets = [0, 256], sizes = [16, 128], strides = [1, 1]} : vector<16x512xf32> to vector<16x128xf32>
    %155 = math.tanh %154 : vector<16x128xf32>
    %156 = vector.extract_strided_slice %137 {offsets = [0, 384], sizes = [16, 128], strides = [1, 1]} : vector<16x512xf32> to vector<16x128xf32>
    %cst_66 = arith.constant 5.000000e-01 : f32
    %157 = vector.broadcast %cst_66 : f32 to vector<16x128xf32>
    %158 = arith.mulf %157, %156 : vector<16x128xf32>
    %159 = math.tanh %158 : vector<16x128xf32>
    %cst_67 = arith.constant 5.000000e-01 : f32
    %160 = vector.broadcast %cst_67 : f32 to vector<16x128xf32>
    %161 = arith.mulf %160, %159 : vector<16x128xf32>
    %cst_68 = arith.constant 5.000000e-01 : f32
    %162 = vector.broadcast %cst_68 : f32 to vector<16x128xf32>
    %163 = arith.addf %161, %162 : vector<16x128xf32>
    %164 = arith.mulf %153, %127 : vector<16x128xf32>
    %165 = arith.mulf %145, %155 : vector<16x128xf32>
    %166 = arith.addf %164, %165 : vector<16x128xf32>
    %167 = math.tanh %166 : vector<16x128xf32>
    %168 = arith.mulf %163, %167 : vector<16x128xf32>
    %c4_i32 = arith.constant 4 : i32
    %c0_69 = arith.constant 0 : index
    %c0_70 = arith.constant 0 : index
    %169 = vector.load %arg9[%c0_69, %c0_70] : memref<16x128xf32, #tpu.memory_space<vmem>>, vector<16x128xf32>
    tpu.vector_store %arg9[%c0_69, %c0_70], %168 {strides = array<i32>} : memref<16x128xf32, #tpu.memory_space<vmem>>, vector<16x128xf32>,
    %c0_71 = arith.constant 0 : index
    %c0_72 = arith.constant 0 : index
    %170 = vector.load %arg10[%c0_71, %c0_72] : memref<16x128xf32, #tpu.memory_space<vmem>>, vector<16x128xf32>
    tpu.vector_store %arg10[%c0_71, %c0_72], %166 {strides = array<i32>} : memref<16x128xf32, #tpu.memory_space<vmem>>, vector<16x128xf32>,
    %c1_i32_73 = arith.constant 1 : i32
    %171 = arith.cmpi eq, %arg0, %c1_i32_73 : i32
    %172 = arith.extui %171 : i1 to i32
    %c0_i32_74 = arith.constant 0 : i32
    %173 = arith.cmpi ne, %172, %c0_i32_74 : i32
    scf.if %173 {
      %174 = vector.extract_strided_slice %168 {offsets = [0, 0], sizes = [8, 128], strides = [1, 1]} : vector<16x128xf32> to vector<8x128xf32>
      %175 = vector.extract_strided_slice %168 {offsets = [8, 0], sizes = [8, 128], strides = [1, 1]} : vector<16x128xf32> to vector<8x128xf32>
      %c0_75 = arith.constant 0 : index
      %c0_76 = arith.constant 0 : index
      %176 = vector.load %arg5[%c0_75, %c0_76] : memref<128x128xf32, #tpu.memory_space<vmem>>, vector<128x128xf32>
      %cst_77 = arith.constant dense<0.000000e+00> : vector<8x128xf32>
      %177 = tpu.matmul %174, %176, %cst_77 {dimension_numbers = #tpu.dot_dimension_numbers<[1], [0], [0], [1], [0, 0, 1, 1], [], []>} : vector<8x128xf32>, vector<128x128xf32>, vector<8x128xf32> -> vector<8x128xf32>
      %178 = arith.mulf %177, %175 : vector<8x128xf32>
      %cst_78 = arith.constant dense<0.000000e+00> : vector<8xf32>
      %179 = vector.multi_reduction <add>, %178, %cst_78 [1] : vector<8x128xf32> to vector<8xf32>
      %180 = vector.shape_cast %179 : vector<8xf32> to vector<8x1xf32>
      %c0_79 = arith.constant 0 : index
      %181 = memref.load %arg6[%c0_79] : memref<1xf32, #tpu.memory_space<smem>>
      %182 = vector.broadcast %181 : f32 to vector<8x1xf32>
      %183 = arith.addf %180, %182 : vector<8x1xf32>
      %184 = vector.shape_cast %183 : vector<8x1xf32> to vector<8x1xf32>
      %185 = vector.broadcast %184 : vector<8x1xf32> to vector<8x128xf32>
      %c0_80 = arith.constant 0 : index
      %c0_81 = arith.constant 0 : index
      %186 = vector.load %arg7[%c0_80, %c0_81] : memref<8x128xf32, #tpu.memory_space<vmem>>, vector<8x128xf32>
      tpu.vector_store %arg7[%c0_80, %c0_81], %185 {strides = array<i32>} : memref<8x128xf32, #tpu.memory_space<vmem>>, vector<8x128xf32>,
    } else {
    }
    return
  }
  func.func @transform_0(%arg0: i32) -> (i32, i32, i32) {
    %c0_i32 = arith.constant 0 : i32
    %c0_i32_0 = arith.constant 0 : i32
    %c0_i32_1 = arith.constant 0 : i32
    return %arg0, %c0_i32, %c0_i32_0 : i32, i32, i32
  }
  func.func @transform_1(%arg0: i32) -> (i32, i32) {
    %c0_i32 = arith.constant 0 : i32
    %c0_i32_0 = arith.constant 0 : i32
    %c0_i32_1 = arith.constant 0 : i32
    return %c0_i32, %c0_i32_0 : i32, i32
  }
  func.func @transform_2(%arg0: i32) -> (i32, i32) {
    %c0_i32 = arith.constant 0 : i32
    %c0_i32_0 = arith.constant 0 : i32
    %c0_i32_1 = arith.constant 0 : i32
    return %c0_i32, %c0_i32_0 : i32, i32
  }
  func.func @transform_3(%arg0: i32) -> (i32, i32) {
    %c0_i32 = arith.constant 0 : i32
    %c0_i32_0 = arith.constant 0 : i32
    %c0_i32_1 = arith.constant 0 : i32
    return %c0_i32, %c0_i32_0 : i32, i32
  }
  func.func @transform_4(%arg0: i32) -> (i32, i32) {
    %c0_i32 = arith.constant 0 : i32
    %c0_i32_0 = arith.constant 0 : i32
    %c0_i32_1 = arith.constant 0 : i32
    return %c0_i32, %c0_i32_0 : i32, i32
  }
  func.func @transform_5(%arg0: i32) -> i32 {
    %c0_i32 = arith.constant 0 : i32
    %c0_i32_0 = arith.constant 0 : i32
    return %c0_i32 : i32
  }
  func.func @transform_6(%arg0: i32) -> (i32, i32) {
    %c0_i32 = arith.constant 0 : i32
    %c0_i32_0 = arith.constant 0 : i32
    %c0_i32_1 = arith.constant 0 : i32
    return %c0_i32, %c0_i32_0 : i32, i32
  }
}

</mosaic_0001>

<bundles_post_ra>
// kernel: tpu_custom_call.1
= control target key start
LH: loop header
LB: loop body
LE: loop exit
PB: predicated region body
PF: predicated region fallthrough
CT: control target
= control target key end

     0   :  { %s2734_s0 = inlined_call_operand.hbm [shape: bf16[8,16,128], index: 0, kind: input, shape index: {}]   ;;  %s2735_s1 = inlined_call_operand.hbm [shape: bf16[128,512], index: 1, kind: input, shape index: {}]   ;;  %s2736_s2 = inlined_call_operand.hbm [shape: bf16[128,512], index: 2, kind: input, shape index: {}]   ;;  %s2737_s3 = inlined_call_operand.vmem [shape: f32[1,512], index: 3, kind: input, shape index: {}]   ;;  %s2738_s4 = inlined_call_operand.hbm [shape: f32[128,128], index: 4, kind: input, shape index: {}]   ;;  %s2739_s5 = inlined_call_operand.<no memory space> [shape: f32[1], index: 5, kind: input, shape index: {}]   ;;  %s2740_s6 = inlined_call_operand.hbm [shape: f32[8,128], index: 6, kind: output, shape index: {}]  }
   0x1   :  { %11 = sst [smem:[#allocation5]] %s2739_s5 }
   0x2   :  { %12 = vsyncpa [#allocation7], 0 }
   0x3   :  { %14 = vsyncpa [#allocation7 + $0x1], 0 }
   0x4   :  { %15 = vsyncpa [#allocation10], 0 }
   0x5   :  { %16 = vsyncpa [#allocation13], 0 }
   0x6   :  { %17 = vsyncpa [#allocation8], 0  ;;  %s2261_s23 = smov 0   ;;  %s2263_s24 = smov 0  }
   0x7   :  { %s2265_s25 = smov 0   ;;  %s2267_s26 = smov 0  }
   0x8 LB: > { %s2280_s5 = sadd.s32 4294967295, %s2210_s26   ;;  %p43_p0 = scmp.ne.s32.totalorder %s2202_s24, %s2198_s23  ;;  %s2210_s26 = sphi %s2267_s26, %s2782_s26   ;;  %s2206_s25 = sphi %s2265_s25, %s2781_s25   ;;  %s2202_s24 = sphi %s2263_s24, %s2780_s24   ;;  %s2198_s23 = sphi %s2261_s23, %s2779_s23  }
   0x9   : > { %p44_p1 = scmp.eq.s32.totalorder %s2280_s5, 0  ;;  %p1490_p2 = scmp.ge.s32.totalorder %s2210_s26, 1 }
   0xa   : > { %p180_p3 = scmp.lt.s32.totalorder %s2210_s26, 3  ;;  %p1491_p4 = scmp.ne.s32.totalorder %s2280_s5, 0 }
   0xb   : > { %p2289_p5 = por %p44_p1, %p43_p0  ;;  %s191_s30 = sshll.u32 %s2735_s1, 4  ;;  %s192_s30 = int_to_ptr.hbm [resolvable:$true] %s191_s30 }
   0xc   : > { %p2296_p6 = pnand %p1490_p2, %p180_p3  ;;  %s2212_s8 = smov [#allocation9]  }
   0xd   : > { %s193_s9 = sshll.u32 %s2212_s8, 4  ;;  %s205_s13 = sshll.u32 %s2736_s2, 4  ;;  %s194_s9 = int_to_ptr.vmem [resolvable:$true] %s193_s9  ;;  %s206_s13 = int_to_ptr.hbm [resolvable:$true] %s205_s13 }
   0xe   : > { %p1870_p7 = pneg %p2296_p6  ;;  %s2213_s14 = smov 256  }
   0xf   : > { %s2214_s15 = smov 16   ;;  %s2215_s16 = smov [#allocation11]  }
  0x10   : > { %p2304_p8 = pnand %p1870_p7, %p44_p1  ;;  %s207_s17 = sshll.u32 %s2215_s16, 4  ;;  %s208_s17 = int_to_ptr.vmem [resolvable:$true] %s207_s17 }
  0x11   : > { %s222_s20 = sshll.u32 %s2738_s4, 4  ;;  %s2216_s21 = smov [#allocation12]   ;;  %s223_s20 = int_to_ptr.hbm [resolvable:$true] %s222_s20 }
  0x12   : > { %1873 = dma.hbm_to_vmem [thread:$0]  (!%p2304_p8), %s192_s30, 4096, %s194_s9, [#allocation10], %s2213_s14, %s2213_s14, %s2214_s15  }
  0x13   : > { %1876 = dma.hbm_to_vmem [thread:$0]  (!%p2304_p8), %s206_s13, 4096, %s208_s17, [#allocation10], %s2213_s14, %s2213_s14, %s2214_s15  }
  0x14   : > { %s224_s22 = sshll.u32 %s2216_s21, 4  ;;  %s2217_s23 = smov 128   ;;  %s225_s22 = int_to_ptr.vmem [resolvable:$true] %s224_s22 }
  0x15   : > { %s2218_s28 = smov 8   ;;  %s2321_s29 = sadd.s32 1, %s2210_s26  }
  0x16   : > { %1879 = dma.hbm_to_vmem [thread:$0]  (!%p2304_p8), %s223_s20, 2048, %s225_s22, [#allocation13], %s2217_s23, %s2217_s23, %s2218_s28  }
  0x17   : > { %s27_s30 = ssub.s32 %s2210_s26, %s2321_s29  ;;  %s30_s8 = sadd.s32 1, %s2206_s25 }
  0x18   : > { %p28_p9 = scmp.eq.s32.totalorder %s27_s30, 0  ;;  %p37_p10 = scmp.ne.s32.totalorder %s2206_s25, %s2202_s24 }
  0x19   : > { %p38_p11 = scmp.eq.s32.totalorder %s2210_s26, 0  ;;  %p1887_p12 = scmp.lt.s32.totalorder %s2210_s26, 2 }
  0x1a   : > { %s2331_s9 = scalar_select %p28_p9, %s2206_s25, %s30_s8  }
  0x1b   : > { %p39_p13 = por %p38_p11, %p37_p10  ;;  %s241_s11 = sand.u32 1, %s2206_s25  }
  0x1c   : > { %s1495_s12 = sshll.u32 %s241_s11, 5  ;;  %s1783_s13 = sshll.u32 %s2210_s26, 5 }
  0x1d   : > { %s251_s10 = scalar_lea.hbm %s2734_s0, %s1783_s13  ;;  %s245_s16 = scalar_lea.vmem [#allocation6], %s1495_s12 }
  0x1e   : > { %s254_s17 = sshll.u32 %s245_s16, 4  ;;  %s252_s18 = sshll.u32 %s251_s10, 4  ;;  %s255_s17 = int_to_ptr.vmem [resolvable:$true] %s254_s17  ;;  %s253_s18 = int_to_ptr.hbm [resolvable:$true] %s252_s18 }
  0x1f   : > { %p2338_p0 = pnand %p1887_p12, %p39_p13  ;;  %s242_s20 = scalar_lea.sflag [#allocation7], %s241_s11 }
  0x20   : > { %s2106_s21 = sshra.s32 %s253_s18, 4  ;;  %s2113_s28 = scalar_lea.hbm %s2734_s0, 64  ;;  %s2107_s21 = int_to_ptr.hbm [resolvable:$true] %s2106_s21 }
  0x21   : > { %s2108_s22 = scalar_lea.hbm %s2107_s21, 32  ;;  %p2110_p3 = pneg %p2338_p0 }
  0x22   : > { %p2109_p2 = scmp.ne.s32.totalorder %s2107_s21, %s2108_s22  ;;  %p2114_p9 = scmp.lt.s32.totalorder %s2107_s21, %s2734_s0 }
  0x23   : > { %p2115_p10 = scmp.lt.s32.totalorder %s2113_s28, %s2108_s22 }
  0x24   : > { %p2111_p7 = pnand %p2110_p3, %p2109_p2 }
  0x25   : > { %p2116_p11 = por %p2115_p10, %p2114_p9 }
  0x26   : > { %p2112_p8 = pneg %p2111_p7 }
  0x28   : > { %p2117_p12 = pnand %p2116_p11, %p2112_p8 }
  0x2a   : > { %2120 = shalt.err (!%p2117_p12)
}
  0x2b   : > { %s2219_s11 = smov 64   ;;  %s2220_s12 = smov 4  }
  0x2c   : > { %1883 = dma.hbm_to_vmem [thread:$0]  (!%p2338_p0), %s253_s18, 512, %s255_s17, %s242_s20, %s2219_s11, %s2219_s11, %s2220_s12  }
  0x2d   : > { %266 = sbr.rel (%p2296_p6) target bundleno = 1110 (0x456), region = 44 }
  0x32   : > { %s268_s13 = sand.u32 1, %s2202_s24  }
  0x33   : > { %s1500_s14 = sshll.u32 %s268_s13, 5  ;;  %s269_s15 = scalar_lea.sflag [#allocation7], %s268_s13 }
  0x34   : > { %s2355_s10 = scalar_lea.vmem [#allocation6], %s1500_s14 }
  0x35   : > { %2181 = dma.done.wait (%p2289_p5), %s269_s15, 512  }
  0x36   : > { %2183 = vsyncadd (%p2289_p5), %s269_s15, 4294966784 }
  0x37   : > { %2185 = dma.done.wait (%p44_p1), [#allocation10], 8192  }
  0x38   : > { %2187 = vsyncadd (%p44_p1), [#allocation10], 4294959104 }
  0x39   : > { %2189 = dma.done.wait (%p44_p1), [#allocation13], 2048  }
  0x3a   : > { %2191 = vsyncadd (%p44_p1), [#allocation13], 4294965248  ;;  %316 = sbr.rel (%p1491_p4) target bundleno = 68 (0x44), region = 64 }
  0x3f   : > { %v2221_v0 = vmov 0.0  }
  0x40   : > { %317 = vst [vmem:[#allocation3] sm:$0xff] %v2221_v0 }
  0x41   : > { %318 = vst [vmem:[#allocation3 + $0x8] sm:$0xff] %v2221_v0 }
  0x42   : > { %319 = vst [vmem:[#allocation4 + $0x8] sm:$0xff] %v2221_v0 }
  0x43   : > { %320 = vst [vmem:[#allocation4] sm:$0xff] %v2221_v0 }
  0x44 PF: > { %v1635_v1 = vld [vmem:[#allocation9 + $0xe0] sm:$0xf]  ;;  %v1818_v2 = vld [vmem:[#allocation9 + $0xec] sm:$0xf0]  ;;  %v1816_v3 = vld [vmem:[#allocation9 + $0xe4] sm:$0xf] }
  0x45   : > { %v1636_v4 = vor.u32 %v1818_v2, %v1635_v1  ;;  %v1637_v5 = vld [vmem:[#allocation9 + $0xf0] sm:$0xf0]  ;;  %v1643_v6 = vld [vmem:[#allocation9 + $0xe8] sm:$0xf]  ;;  %v1819_v7 = vld [vmem:[#allocation9 + $0xf4] sm:$0xf0] }
  0x46   : > { %v1640_v8 = vor.u32 %v1816_v3, %v1637_v5  ;;  %v1644_v9 = vor.u32 %v1819_v7, %v1643_v6  ;;  %v1817_v10 = vld [vmem:[#allocation9 + $0xec] sm:$0xf]  ;;  %v1645_v11 = vld [vmem:[#allocation9 + $0xf8] sm:$0xf0]  ;;  %v1619_v12 = vld [vmem:[#allocation9 + $0xc0] sm:$0xf] }
  0x47   : > { %555 = vmatpush.bf16.msra.mxu0 %v1636_v4  ;;  %v1648_v13 = vor.u32 %v1817_v10, %v1645_v11  ;;  %v1814_v14 = vld [vmem:[#allocation9 + $0xcc] sm:$0xf0]  ;;  %v1812_v15 = vld [vmem:[#allocation9 + $0xc4] sm:$0xf]  ;;  %v1621_v16 = vld [vmem:[#allocation9 + $0xd0] sm:$0xf0] }
  0x48   : > { %584 = vmatpush.bf16.msra.mxu1 %v1640_v8  ;;  %613 = vmatpush.bf16.msra.mxu2 %v1644_v9  ;;  %v1620_v17 = vor.u32 %v1814_v14, %v1619_v12  ;;  %v1624_v18 = vor.u32 %v1812_v15, %v1621_v16  ;;  %v1627_v19 = vld [vmem:[#allocation9 + $0xc8] sm:$0xf]  ;;  %v1815_v20 = vld [vmem:[#allocation9 + $0xd4] sm:$0xf0]  ;;  %v1813_v21 = vld [vmem:[#allocation9 + $0xcc] sm:$0xf] }
  0x49   : > { %642 = vmatpush.bf16.msra.mxu3 %v1648_v13  ;;  %v1628_v22 = vor.u32 %v1815_v20, %v1627_v19  ;;  %v1629_v23 = vld [vmem:[#allocation9 + $0xd8] sm:$0xf0]  ;;  %v1603_v24 = vld [vmem:[#allocation9 + $0xa0] sm:$0xf]  ;;  %v1810_v25 = vld [vmem:[#allocation9 + $0xac] sm:$0xf0] }
  0x4a   : > { %v1632_v26 = vor.u32 %v1813_v21, %v1629_v23  ;;  %v1808_v27 = vld [vmem:[#allocation9 + $0xa4] sm:$0xf]  ;;  %v1605_v28 = vld [vmem:[#allocation9 + $0xb0] sm:$0xf0]  ;;  %v1611_v29 = vld [vmem:[#allocation9 + $0xa8] sm:$0xf]  ;;  %v1604_v30 = vor.u32 %v1810_v25, %v1603_v24 }
  0x4b   : > { %556 = vmatpush.bf16.msra.mxu0 %v1620_v17  ;;  %v1811_v31 = vld [vmem:[#allocation9 + $0xb4] sm:$0xf0]  ;;  %v1809_v32 = vld [vmem:[#allocation9 + $0xac] sm:$0xf]  ;;  %v1613_v33 = vld [vmem:[#allocation9 + $0xb8] sm:$0xf0]  ;;  %v1608_v34 = vor.u32 %v1808_v27, %v1605_v28 }
  0x4c   : > { %585 = vmatpush.bf16.msra.mxu1 %v1624_v18  ;;  %614 = vmatpush.bf16.msra.mxu2 %v1628_v22  ;;  %v1612_v35 = vor.u32 %v1811_v31, %v1611_v29  ;;  %v1587_v36 = vld [vmem:[#allocation9 + $0x80] sm:$0xf]  ;;  %v1806_v37 = vld [vmem:[#allocation9 + $0x8c] sm:$0xf0]  ;;  %v1804_v38 = vld [vmem:[#allocation9 + $0x84] sm:$0xf]  ;;  %v1616_v39 = vor.u32 %v1809_v32, %v1613_v33 }
  0x4d   : > { %643 = vmatpush.bf16.msra.mxu3 %v1632_v26  ;;  %v1589_v40 = vld [vmem:[#allocation9 + $0x90] sm:$0xf0]  ;;  %v1595_v41 = vld [vmem:[#allocation9 + $0x88] sm:$0xf]  ;;  %v1807_v42 = vld [vmem:[#allocation9 + $0x94] sm:$0xf0]  ;;  %v1588_v45 = vor.u32 %v1806_v37, %v1587_v36 }
  0x4e   : > { %v1805_v43 = vld [vmem:[#allocation9 + $0x8c] sm:$0xf]  ;;  %v1597_v44 = vld [vmem:[#allocation9 + $0x98] sm:$0xf0]  ;;  %v1592_v46 = vor.u32 %v1804_v38, %v1589_v40  ;;  %v1596_v47 = vor.u32 %v1807_v42, %v1595_v41  ;;  %v1571_v48 = vld [vmem:[#allocation9 + $0x60] sm:$0xf] }
  0x4f   : > { %557 = vmatpush.bf16.msra.mxu0 %v1604_v30  ;;  %v1802_v49 = vld [vmem:[#allocation9 + $0x6c] sm:$0xf0]  ;;  %v1800_v50 = vld [vmem:[#allocation9 + $0x64] sm:$0xf]  ;;  %v1600_v51 = vor.u32 %v1805_v43, %v1597_v44  ;;  %v1573_v52 = vld [vmem:[#allocation9 + $0x70] sm:$0xf0] }
  0x50   : > { %586 = vmatpush.bf16.msra.mxu1 %v1608_v34  ;;  %615 = vmatpush.bf16.msra.mxu2 %v1612_v35  ;;  %v1579_v53 = vld [vmem:[#allocation9 + $0x68] sm:$0xf]  ;;  %v1803_v54 = vld [vmem:[#allocation9 + $0x74] sm:$0xf0]  ;;  %v1801_v55 = vld [vmem:[#allocation9 + $0x6c] sm:$0xf]  ;;  %v1572_v57 = vor.u32 %v1802_v49, %v1571_v48  ;;  %v1576_v58 = vor.u32 %v1800_v50, %v1573_v52 }
  0x51   : > { %644 = vmatpush.bf16.msra.mxu3 %v1616_v39  ;;  %v1581_v56 = vld [vmem:[#allocation9 + $0x78] sm:$0xf0]  ;;  %v1580_v59 = vor.u32 %v1803_v54, %v1579_v53  ;;  %v1555_v60 = vld [vmem:[#allocation9 + $0x40] sm:$0xf]  ;;  %v1798_v61 = vld [vmem:[#allocation9 + $0x4c] sm:$0xf0] }
  0x52   : > { %v1796_v62 = vld [vmem:[#allocation9 + $0x44] sm:$0xf]  ;;  %v1584_v63 = vor.u32 %v1801_v55, %v1581_v56  ;;  %v1557_v0 = vld [vmem:[#allocation9 + $0x50] sm:$0xf0]  ;;  %v1563_v1 = vld [vmem:[#allocation9 + $0x48] sm:$0xf]  ;;  %v1556_v5 = vor.u32 %v1798_v61, %v1555_v60 }
  0x53   : > { %558 = vmatpush.bf16.msra.mxu0 %v1588_v45  ;;  %v1799_v2 = vld [vmem:[#allocation9 + $0x54] sm:$0xf0]  ;;  %v1797_v3 = vld [vmem:[#allocation9 + $0x4c] sm:$0xf]  ;;  %v1565_v4 = vld [vmem:[#allocation9 + $0x58] sm:$0xf0]  ;;  %v1560_v6 = vor.u32 %v1796_v62, %v1557_v0 }
  0x54   : > { %587 = vmatpush.bf16.msra.mxu1 %v1592_v46  ;;  %616 = vmatpush.bf16.msra.mxu2 %v1596_v47  ;;  %v1564_v7 = vor.u32 %v1799_v2, %v1563_v1  ;;  %v1539_v8 = vld [vmem:[#allocation9 + $0x20] sm:$0xf]  ;;  %v1794_v9 = vld [vmem:[#allocation9 + $0x2c] sm:$0xf0]  ;;  %v1792_v10 = vld [vmem:[#allocation9 + $0x24] sm:$0xf]  ;;  %v1568_v11 = vor.u32 %v1797_v3, %v1565_v4 }
  0x55   : > { %645 = vmatpush.bf16.msra.mxu3 %v1600_v51  ;;  %v1541_v12 = vld [vmem:[#allocation9 + $0x30] sm:$0xf0]  ;;  %v1547_v13 = vld [vmem:[#allocation9 + $0x28] sm:$0xf]  ;;  %v1795_v14 = vld [vmem:[#allocation9 + $0x34] sm:$0xf0]  ;;  %v1540_v17 = vor.u32 %v1794_v9, %v1539_v8 }
  0x56   : > { %v1793_v15 = vld [vmem:[#allocation9 + $0x2c] sm:$0xf]  ;;  %v1549_v16 = vld [vmem:[#allocation9 + $0x38] sm:$0xf0]  ;;  %v1523_v18 = vld [vmem:[#allocation9] sm:$0xf]  ;;  %v1544_v19 = vor.u32 %v1792_v10, %v1541_v12  ;;  %v1548_v20 = vor.u32 %v1795_v14, %v1547_v13 }
  0x57   : > { %559 = vmatpush.bf16.msra.mxu0 %v1572_v57  ;;  %v1790_v21 = vld [vmem:[#allocation9 + $0xc] sm:$0xf0]  ;;  %v1788_v22 = vld [vmem:[#allocation9 + $0x4] sm:$0xf]  ;;  %v1525_v23 = vld [vmem:[#allocation9 + $0x10] sm:$0xf0]  ;;  %v1552_v24 = vor.u32 %v1793_v15, %v1549_v16 }
  0x58   : > { %588 = vmatpush.bf16.msra.mxu1 %v1576_v58  ;;  %617 = vmatpush.bf16.msra.mxu2 %v1580_v59  ;;  %v1531_v25 = vld [vmem:[#allocation9 + $0x8] sm:$0xf]  ;;  %v1791_v26 = vld [vmem:[#allocation9 + $0x14] sm:$0xf0]  ;;  %v1789_v27 = vld [vmem:[#allocation9 + $0xc] sm:$0xf]  ;;  %v1524_v31 = vor.u32 %v1790_v21, %v1523_v18  ;;  %v1528_v34 = vor.u32 %v1788_v22, %v1525_v23 }
  0x59   : > { %646 = vmatpush.bf16.msra.mxu3 %v1584_v63  ;;  %v1533_v28 = vld [vmem:[#allocation9 + $0x18] sm:$0xf0]  ;;  %v1763_v29 = vld [vmem:[#allocation11 + $0xe0] sm:$0xf]  ;;  %v1850_v30 = vld [vmem:[#allocation11 + $0xec] sm:$0xf0]  ;;  %v1532_v35 = vor.u32 %v1791_v26, %v1531_v25 }
  0x5a   : > { %v1848_v32 = vld [vmem:[#allocation11 + $0xe4] sm:$0xf]  ;;  %v1765_v33 = vld [vmem:[#allocation11 + $0xf0] sm:$0xf0]  ;;  %v1536_v37 = vor.u32 %v1789_v27, %v1533_v28  ;;  %v2372_v38 = vor.u32 %v1850_v30, %v1763_v29  ;;  %v1771_v39 = vld [vmem:[#allocation11 + $0xe8] sm:$0xf] }
  0x5b   : > { %560 = vmatpush.bf16.msra.mxu0 %v1556_v5  ;;  %v1784_v36 = vld [vmem:[%s2355_s10] sm:$0xff]  ;;  %v1851_v40 = vld [vmem:[#allocation11 + $0xf4] sm:$0xf0]  ;;  %v1849_v41 = vld [vmem:[#allocation11 + $0xec] sm:$0xf]  ;;  %v2374_v42 = vor.u32 %v1848_v32, %v1765_v33  ;;  %p1777_p1 = scmp.ne.s32.totalorder %s2280_s5, 1 }
  0x5c   : > { %589 = vmatpush.bf16.msra.mxu1 %v1560_v6  ;;  %618 = vmatpush.bf16.msra.mxu2 %v1564_v7  ;;  %v1773_v43 = vld [vmem:[#allocation11 + $0xf8] sm:$0xf0]  ;;  %v1747_v44 = vld [vmem:[#allocation11 + $0xc0] sm:$0xf]  ;;  %v1846_v45 = vld [vmem:[#allocation11 + $0xcc] sm:$0xf0]  ;;  %v2376_v48 = vor.u32 %v1851_v40, %v1771_v39 }
  0x5d   : > { %647 = vmatpush.bf16.msra.mxu3 %v1568_v11  ;;  %v1844_v46 = vld [vmem:[#allocation11 + $0xc4] sm:$0xf]  ;;  %v1749_v47 = vld [vmem:[#allocation11 + $0xd0] sm:$0xf0]  ;;  %v2379_v49 = vor.u32 %v1849_v41, %v1773_v43  ;;  %v2381_v50 = vor.u32 %v1846_v45, %v1747_v44  ;;  %v1755_v51 = vld [vmem:[#allocation11 + $0xc8] sm:$0xf] }
  0x5e   : > { %v1847_v52 = vld [vmem:[#allocation11 + $0xd4] sm:$0xf0]  ;;  %v1845_v53 = vld [vmem:[#allocation11 + $0xcc] sm:$0xf]  ;;  %v2384_v54 = vor.u32 %v1844_v46, %v1749_v47  ;;  %v1757_v55 = vld [vmem:[#allocation11 + $0xd8] sm:$0xf0] }
  0x5f   : > { %561 = vmatpush.bf16.msra.mxu0 %v1540_v17  ;;  %v1731_v56 = vld [vmem:[#allocation11 + $0xa0] sm:$0xf]  ;;  %v1842_v57 = vld [vmem:[#allocation11 + $0xac] sm:$0xf0]  ;;  %v1840_v58 = vld [vmem:[#allocation11 + $0xa4] sm:$0xf]  ;;  %v2387_v60 = vor.u32 %v1847_v52, %v1755_v51  ;;  %v2391_v61 = vor.u32 %v1845_v53, %v1757_v55 }
  0x60   : > { %590 = vmatpush.bf16.msra.mxu1 %v1544_v19  ;;  %619 = vmatpush.bf16.msra.mxu2 %v1548_v20  ;;  %v1733_v59 = vld [vmem:[#allocation11 + $0xb0] sm:$0xf0]  ;;  %v2393_v62 = vor.u32 %v1842_v57, %v1731_v56  ;;  %v1739_v63 = vld [vmem:[#allocation11 + $0xa8] sm:$0xf]  ;;  %v1843_v0 = vld [vmem:[#allocation11 + $0xb4] sm:$0xf0] }
  0x61   : > { %648 = vmatpush.bf16.msra.mxu3 %v1552_v24  ;;  %v1841_v1 = vld [vmem:[#allocation11 + $0xac] sm:$0xf]  ;;  %v2396_v2 = vor.u32 %v1840_v58, %v1733_v59  ;;  %v1741_v3 = vld [vmem:[#allocation11 + $0xb8] sm:$0xf0]  ;;  %v1715_v4 = vld [vmem:[#allocation11 + $0x80] sm:$0xf]  ;;  %v2399_v8 = vor.u32 %v1843_v0, %v1739_v63 }
  0x62   : > { %v1838_v5 = vld [vmem:[#allocation11 + $0x8c] sm:$0xf0]  ;;  %v1836_v6 = vld [vmem:[#allocation11 + $0x84] sm:$0xf]  ;;  %v1717_v7 = vld [vmem:[#allocation11 + $0x90] sm:$0xf0]  ;;  %v2403_v9 = vor.u32 %v1841_v1, %v1741_v3 }
  0x63   : > { %562 = vmatpush.bf16.msra.mxu0 %v1524_v31  ;;  %v2405_v10 = vor.u32 %v1838_v5, %v1715_v4  ;;  %v1723_v11 = vld [vmem:[#allocation11 + $0x88] sm:$0xf]  ;;  %v1839_v12 = vld [vmem:[#allocation11 + $0x94] sm:$0xf0]  ;;  %v1837_v13 = vld [vmem:[#allocation11 + $0x8c] sm:$0xf]  ;;  %v2408_v14 = vor.u32 %v1836_v6, %v1717_v7 }
  0x64   : > { %591 = vmatpush.bf16.msra.mxu1 %v1528_v34  ;;  %620 = vmatpush.bf16.msra.mxu2 %v1532_v35  ;;  %v1725_v15 = vld [vmem:[#allocation11 + $0x98] sm:$0xf0]  ;;  %v1699_v16 = vld [vmem:[#allocation11 + $0x60] sm:$0xf]  ;;  %v1834_v17 = vld [vmem:[#allocation11 + $0x6c] sm:$0xf0]  ;;  %v2412_v21 = vor.u32 %v1839_v12, %v1723_v11 }
  0x65   : > { %649 = vmatpush.bf16.msra.mxu3 %v1536_v37  ;;  %v1832_v18 = vld [vmem:[#allocation11 + $0x64] sm:$0xf]  ;;  %v1701_v19 = vld [vmem:[#allocation11 + $0x70] sm:$0xf0]  ;;  %v1785_v20 = vld [vmem:[%s2355_s10 + $0x8] sm:$0xff]  ;;  %v2416_v22 = vor.u32 %v1837_v13, %v1725_v15  ;;  %v2418_v23 = vor.u32 %v1834_v17, %v1699_v16  ;;  %s1394_s16 = sld [smem:[#allocation5]] (!%p1777_p1) }
  0x66   : > { %563 = vmatmul.bf16.vlgmr.msra.gmra.mxu0 %v1784_v36  ;;  %v1707_v24 = vld [vmem:[#allocation11 + $0x68] sm:$0xf]  ;;  %v1835_v25 = vld [vmem:[#allocation11 + $0x74] sm:$0xf0]  ;;  %v1833_v26 = vld [vmem:[#allocation11 + $0x6c] sm:$0xf]  ;;  %v2421_v27 = vor.u32 %v1832_v18, %v1701_v19 }
  0x67   : > { %911 = vmatpush.bf16.msrb.mxu0 %v2372_v38  ;;  %592 = vmatmul.bf16.vlgmr.msra.gmra.mxu1 %v1784_v36  ;;  %v1709_v28 = vld [vmem:[#allocation11 + $0x78] sm:$0xf0]  ;;  %v1683_v29 = vld [vmem:[#allocation11 + $0x40] sm:$0xf]  ;;  %v1830_v30 = vld [vmem:[#allocation11 + $0x4c] sm:$0xf0]  ;;  %v2424_v33 = vor.u32 %v1835_v25, %v1707_v24 }
  0x68   : > { %925 = vmatpush.bf16.msrb.mxu1 %v2374_v42  ;;  %621 = vmatmul.bf16.vlgmr.msra.gmra.mxu2 %v1784_v36  ;;  %v1828_v31 = vld [vmem:[#allocation11 + $0x44] sm:$0xf]  ;;  %v1685_v32 = vld [vmem:[#allocation11 + $0x50] sm:$0xf0]  ;;  %v2428_v34 = vor.u32 %v1833_v26, %v1709_v28  ;;  %v2430_v35 = vor.u32 %v1830_v30, %v1683_v29  ;;  %v1831_v37 = vld [vmem:[#allocation11 + $0x54] sm:$0xf0] }
  0x69   : > { %650 = vmatmul.bf16.vlgmr.msra.gmra.mxu3 %v1784_v36  ;;  %939 = vmatpush.bf16.msrb.mxu2 %v2376_v48  ;;  %v1691_v36 = vld [vmem:[#allocation11 + $0x48] sm:$0xf]  ;;  %v2433_v39 = vor.u32 %v1828_v31, %v1685_v32  ;;  %v1829_v40 = vld [vmem:[#allocation11 + $0x4c] sm:$0xf]  ;;  %v1693_v41 = vld [vmem:[#allocation11 + $0x58] sm:$0xf0] }
  0x6a   : > { %953 = vmatpush.bf16.msrb.mxu3 %v2379_v49  ;;  %v2436_v43 = vor.u32 %v1831_v37, %v1691_v36  ;;  %v1667_v44 = vld [vmem:[#allocation11 + $0x20] sm:$0xf]  ;;  %v1826_v45 = vld [vmem:[#allocation11 + $0x2c] sm:$0xf0]  ;;  %v1824_v46 = vld [vmem:[#allocation11 + $0x24] sm:$0xf]  ;;  %v2440_v47 = vor.u32 %v1829_v40, %v1693_v41 }
  0x6b   : > { %912 = vmatpush.bf16.msrb.mxu0 %v2381_v50  ;;  %v2442_v51 = vor.u32 %v1826_v45, %v1667_v44  ;;  %v1669_v52 = vld [vmem:[#allocation11 + $0x30] sm:$0xf0]  ;;  %v1675_v53 = vld [vmem:[#allocation11 + $0x28] sm:$0xf]  ;;  %v1827_v55 = vld [vmem:[#allocation11 + $0x34] sm:$0xf0] }
  0x6c   : > { %926 = vmatpush.bf16.msrb.mxu1 %v2384_v54  ;;  %v2445_v56 = vor.u32 %v1824_v46, %v1669_v52  ;;  %v1825_v57 = vld [vmem:[#allocation11 + $0x2c] sm:$0xf]  ;;  %v1677_v58 = vld [vmem:[#allocation11 + $0x38] sm:$0xf0]  ;;  %v1651_v59 = vld [vmem:[#allocation11] sm:$0xf]  ;;  %v2448_v3 = vor.u32 %v1827_v55, %v1675_v53 }
  0x6d   : > { %940 = vmatpush.bf16.msrb.mxu2 %v2387_v60  ;;  %v1822_v63 = vld [vmem:[#allocation11 + $0xc] sm:$0xf0]  ;;  %v1820_v0 = vld [vmem:[#allocation11 + $0x4] sm:$0xf]  ;;  %v1653_v1 = vld [vmem:[#allocation11 + $0x10] sm:$0xf0]  ;;  %v2452_v4 = vor.u32 %v1825_v57, %v1677_v58 }
  0x6e   : > { %954 = vmatpush.bf16.msrb.mxu3 %v2391_v61  ;;  %v2454_v5 = vor.u32 %v1822_v63, %v1651_v59  ;;  %v1659_v6 = vld [vmem:[#allocation11 + $0x8] sm:$0xf]  ;;  %v1823_v7 = vld [vmem:[#allocation11 + $0x14] sm:$0xf0]  ;;  %v2457_v11 = vor.u32 %v1820_v0, %v1653_v1  ;;  %v1821_v12 = vld [vmem:[#allocation11 + $0xc] sm:$0xf] }
  0x6f   : > { %913 = vmatpush.bf16.msrb.mxu0 %v2393_v62  ;;  %v1661_v13 = vld [vmem:[#allocation11 + $0x18] sm:$0xf0]  ;;  %v2460_v15 = vor.u32 %v1823_v7, %v1659_v6  ;;  %v1786_v17 = vld [vmem:[%s2355_s10 + $0x10] sm:$0xff]  ;;  %v703_v19 = vld [vmem:[#allocation3] sm:$0xff] }
  0x70   : > { %927 = vmatpush.bf16.msrb.mxu1 %v2396_v2  ;;  %v2464_v16 = vor.u32 %v1821_v12, %v1661_v13  ;;  %v1787_v18 = vld [vmem:[%s2355_s10 + $0x18] sm:$0xff]  ;;  %v361_v32 = vld [vmem:[%s2737_s3] sm:$0xf] }
  0x71   : > { %941 = vmatpush.bf16.msrb.mxu2 %v2399_v8  ;;  %v2546_v36 = vperm.slane %v361_v32, 0  ;;  %v2550_v40 = vperm.slane %v361_v32, 1  ;;  %v2560_v53 = vperm.slane %v361_v32, 2  ;;  %v2562_v55 = vperm.slane %v361_v32, 3 }
  0x72   : > { %955 = vmatpush.bf16.msrb.mxu3 %v2403_v9 }
  0x73   : > { %914 = vmatpush.bf16.msrb.mxu0 %v2405_v10 }
  0x74   : > { %928 = vmatpush.bf16.msrb.mxu1 %v2408_v14 }
  0x75   : > { %942 = vmatpush.bf16.msrb.mxu2 %v2412_v21 }
  0x76   : > { %956 = vmatpush.bf16.msrb.mxu3 %v2416_v22  ;;  %568 = vmatmul.bf16.gmra.mxu0 %v1785_v20 }
  0x77   : > { %915 = vmatpush.bf16.msrb.mxu0 %v2418_v23  ;;  %597 = vmatmul.bf16.gmra.mxu1 %v1785_v20 }
  0x78   : > { %929 = vmatpush.bf16.msrb.mxu1 %v2421_v27  ;;  %626 = vmatmul.bf16.gmra.mxu2 %v1785_v20 }
  0x79   : > { %655 = vmatmul.bf16.gmra.mxu3 %v1785_v20  ;;  %943 = vmatpush.bf16.msrb.mxu2 %v2424_v33  ;;  %v704_v20 = vld [vmem:[#allocation3 + $0x8] sm:$0xff] }
  0x7a   : > { %957 = vmatpush.bf16.msrb.mxu3 %v2428_v34  ;;  %v718_v24 = vpack.c.bf16 %v704_v20, %v703_v19 }
  0x7b   : > { %916 = vmatpush.bf16.msrb.mxu0 %v2430_v35 }
  0x7c   : > { %930 = vmatpush.bf16.msrb.mxu1 %v2433_v39 }
  0x7d   : > { %944 = vmatpush.bf16.msrb.mxu2 %v2436_v43 }
  0x7e   : > { %958 = vmatpush.bf16.msrb.mxu3 %v2440_v47 }
  0x7f   : > { %917 = vmatpush.bf16.msrb.mxu0 %v2442_v51 }
  0x80   : > { %931 = vmatpush.bf16.msrb.mxu1 %v2445_v56 }
  0x81   : > { %945 = vmatpush.bf16.msrb.mxu2 %v2448_v3 }
  0x82   : > { %959 = vmatpush.bf16.msrb.mxu3 %v2452_v4 }
  0x83   : > { %918 = vmatpush.bf16.msrb.mxu0 %v2454_v5 }
  0x84   : > { %932 = vmatpush.bf16.msrb.mxu1 %v2457_v11 }
  0x85   : > { %946 = vmatpush.bf16.msrb.mxu2 %v2460_v15 }
  0x86   : > { %960 = vmatpush.bf16.msrb.mxu3 %v2464_v16  ;;  %573 = vmatmul.bf16.gmra.mxu0 %v1786_v17 }
  0x87   : > { %1023 = vmatpush.bf16.msra.mxu0 %v2372_v38  ;;  %602 = vmatmul.bf16.gmra.mxu1 %v1786_v17 }
  0x88   : > { %1037 = vmatpush.bf16.msra.mxu1 %v2374_v42  ;;  %631 = vmatmul.bf16.gmra.mxu2 %v1786_v17 }
  0x89   : > { %1051 = vmatpush.bf16.msra.mxu2 %v2376_v48  ;;  %660 = vmatmul.bf16.gmra.mxu3 %v1786_v17 }
  0x8a   : > { %1065 = vmatpush.bf16.msra.mxu3 %v2379_v49 }
  0x8b   : > { %1024 = vmatpush.bf16.msra.mxu0 %v2381_v50 }
  0x8c   : > { %1038 = vmatpush.bf16.msra.mxu1 %v2384_v54 }
  0x8d   : > { %1052 = vmatpush.bf16.msra.mxu2 %v2387_v60 }
  0x8e   : > { %1066 = vmatpush.bf16.msra.mxu3 %v2391_v61 }
  0x8f   : > { %1025 = vmatpush.bf16.msra.mxu0 %v2393_v62 }
  0x90   : > { %1039 = vmatpush.bf16.msra.mxu1 %v2396_v2 }
  0x91   : > { %1053 = vmatpush.bf16.msra.mxu2 %v2399_v8 }
  0x92   : > { %1067 = vmatpush.bf16.msra.mxu3 %v2403_v9 }
  0x93   : > { %1026 = vmatpush.bf16.msra.mxu0 %v2405_v10 }
  0x94   : > { %1040 = vmatpush.bf16.msra.mxu1 %v2408_v14 }
  0x95   : > { %1054 = vmatpush.bf16.msra.mxu2 %v2412_v21 }
  0x96   : > { %1068 = vmatpush.bf16.msra.mxu3 %v2416_v22  ;;  %578 = vmatmul.bf16.gmra.mxu0 %v1787_v18 }
  0x97   : > { %1027 = vmatpush.bf16.msra.mxu0 %v2418_v23  ;;  %607 = vmatmul.bf16.gmra.mxu1 %v1787_v18 }
  0x98   : > { %1041 = vmatpush.bf16.msra.mxu1 %v2421_v27  ;;  %636 = vmatmul.bf16.gmra.mxu2 %v1787_v18 }
  0x99   : > { %1055 = vmatpush.bf16.msra.mxu2 %v2424_v33  ;;  %665 = vmatmul.bf16.gmra.mxu3 %v1787_v18 }
  0x9a   : > { %1069 = vmatpush.bf16.msra.mxu3 %v2428_v34 }
  0x9b   : > { %1028 = vmatpush.bf16.msra.mxu0 %v2430_v35 }
  0x9c   : > { %1042 = vmatpush.bf16.msra.mxu1 %v2433_v39 }
  0x9d   : > { %1056 = vmatpush.bf16.msra.mxu2 %v2436_v43 }
  0x9e   : > { %1070 = vmatpush.bf16.msra.mxu3 %v2440_v47 }
  0x9f   : > { %1029 = vmatpush.bf16.msra.mxu0 %v2442_v51 }
  0xa0   : > { %1043 = vmatpush.bf16.msra.mxu1 %v2445_v56 }
  0xa1   : > { %1057 = vmatpush.bf16.msra.mxu2 %v2448_v3 }
  0xa2   : > { %1071 = vmatpush.bf16.msra.mxu3 %v2452_v4 }
  0xa3   : > { %1030 = vmatpush.bf16.msra.mxu0 %v2454_v5 }
  0xa4   : > { %1044 = vmatpush.bf16.msra.mxu1 %v2457_v11 }
  0xa5   : > { %1058 = vmatpush.bf16.msra.mxu2 %v2460_v15 }
  0xa6   : > { %1072 = vmatpush.bf16.msra.mxu3 %v2464_v16  ;;  %919 = vmatmul.bf16.vlgmr.msrb.gmra.mxu0 %v718_v24 }
  0xa7   : > { %933 = vmatmul.bf16.vlgmr.msrb.gmra.mxu1 %v718_v24  ;;  %1135 = vmatpush.bf16.msrb.mxu0 %v2372_v38 }
  0xa8   : > { %947 = vmatmul.bf16.vlgmr.msrb.gmra.mxu2 %v718_v24  ;;  %1149 = vmatpush.bf16.msrb.mxu1 %v2374_v42 }
  0xa9   : > { %961 = vmatmul.bf16.vlgmr.msrb.gmra.mxu3 %v718_v24  ;;  %1163 = vmatpush.bf16.msrb.mxu2 %v2376_v48 }
  0xaa   : > { %1177 = vmatpush.bf16.msrb.mxu3 %v2379_v49 }
  0xab   : > { %1136 = vmatpush.bf16.msrb.mxu0 %v2381_v50 }
  0xac   : > { %1150 = vmatpush.bf16.msrb.mxu1 %v2384_v54 }
  0xad   : > { %1164 = vmatpush.bf16.msrb.mxu2 %v2387_v60 }
  0xae   : > { %1178 = vmatpush.bf16.msrb.mxu3 %v2391_v61 }
  0xaf   : > { %1137 = vmatpush.bf16.msrb.mxu0 %v2393_v62 }
  0xb0   : > { %1151 = vmatpush.bf16.msrb.mxu1 %v2396_v2 }
  0xb1   : > { %1165 = vmatpush.bf16.msrb.mxu2 %v2399_v8 }
  0xb2   : > { %1179 = vmatpush.bf16.msrb.mxu3 %v2403_v9 }
  0xb3   : > { %1138 = vmatpush.bf16.msrb.mxu0 %v2405_v10 }
  0xb4   : > { %1152 = vmatpush.bf16.msrb.mxu1 %v2408_v14 }
  0xb5   : > { %1166 = vmatpush.bf16.msrb.mxu2 %v2412_v21 }
  0xb6   : > { %1180 = vmatpush.bf16.msrb.mxu3 %v2416_v22 }
  0xb7   : > { %1139 = vmatpush.bf16.msrb.mxu0 %v2418_v23 }
  0xb8   : > { %1153 = vmatpush.bf16.msrb.mxu1 %v2421_v27 }
  0xb9   : > { %1167 = vmatpush.bf16.msrb.mxu2 %v2424_v33 }
  0xba   : > { %1181 = vmatpush.bf16.msrb.mxu3 %v2428_v34 }
  0xbb   : > { %1140 = vmatpush.bf16.msrb.mxu0 %v2430_v35 }
  0xbc   : > { %1154 = vmatpush.bf16.msrb.mxu1 %v2433_v39 }
  0xbd   : > { %1168 = vmatpush.bf16.msrb.mxu2 %v2436_v43 }
  0xbe   : > { %1182 = vmatpush.bf16.msrb.mxu3 %v2440_v47 }
  0xbf   : > { %1141 = vmatpush.bf16.msrb.mxu0 %v2442_v51 }
  0xc0   : > { %1155 = vmatpush.bf16.msrb.mxu1 %v2445_v56 }
  0xc1   : > { %1169 = vmatpush.bf16.msrb.mxu2 %v2448_v3 }
  0xc2   : > { %1183 = vmatpush.bf16.msrb.mxu3 %v2452_v4 }
  0xc3   : > { %1142 = vmatpush.bf16.msrb.mxu0 %v2454_v5 }
  0xc4   : > { %1156 = vmatpush.bf16.msrb.mxu1 %v2457_v11 }
  0xc5   : > { %1170 = vmatpush.bf16.msrb.mxu2 %v2460_v15 }
  0xc6   : > { %1184 = vmatpush.bf16.msrb.mxu3 %v2464_v16 }
  0xe3   : > { %v564_v25 = vpop.f32.mrf.mxu0 }
  0xe4   : > { %v593_v26 = vpop.f32.mrf.mxu1 }
  0xeb   : > { %v2535_v28 = vpop.f32.mrf.mxu2  ;;  %v2539_v30 = vpop.f32.mrf.mxu0 }
  0xec   : > { %v2537_v29 = vpop.f32.mrf.mxu3  ;;  %v2541_v31 = vpop.f32.mrf.mxu1 }
  0xf3   : > { %v2548_v37 = vpop.f32.mrf.mxu2  ;;  %v569_v44 = vpop.f32.mrf.mxu0 }
  0xf4   : > { %v2552_v41 = vpop.f32.mrf.mxu3  ;;  %v2555_v45 = vadd.f32 %v569_v44, %v2546_v36  ;;  %v598_v46 = vpop.f32.mrf.mxu1 }
  0xf5   : > { %v2558_v52 = vadd.f32 %v598_v46, %v2550_v40 }
  0xfb   : > { %v627_v57 = vpop.f32.mrf.mxu2  ;;  %v571_v63 = vpop.f32.mrf.mxu0 }
  0xfc   : > { %v2565_v58 = vadd.f32 %v627_v57, %v2560_v53  ;;  %v656_v59 = vpop.f32.mrf.mxu3  ;;  %v2571_v1 = vadd.f32 %v571_v63, %v2546_v36  ;;  %v600_v6 = vpop.f32.mrf.mxu1 }
  0xfd   : > { %v2568_v0 = vadd.f32 %v656_v59, %v2562_v55  ;;  %v2574_v7 = vadd.f32 %v600_v6, %v2550_v40 }
 0x103   : > { %v629_v12 = vpop.f32.mrf.mxu2  ;;  %v574_v18 = vpop.f32.mrf.mxu0 }
 0x104   : > { %v2577_v13 = vadd.f32 %v629_v12, %v2560_v53  ;;  %v658_v17 = vpop.f32.mrf.mxu3  ;;  %v2583_v20 = vadd.f32 %v574_v18, %v2546_v36  ;;  %v603_v24 = vpop.f32.mrf.mxu1 }
 0x105   : > { %v2580_v19 = vadd.f32 %v658_v17, %v2562_v55  ;;  %v2586_v32 = vadd.f32 %v603_v24, %v2550_v40 }
 0x106   : > { %2745 = vst [vmem:[#allocation19_spill] sm:$0xff] %v2577_v13 }
 0x107   : > { %2746 = vst [vmem:[#allocation20_spill] sm:$0xff] %v2580_v19 }
 0x108   : > { %2747 = vst [vmem:[#allocation21_spill] sm:$0xff] %v2583_v20 }
 0x109   : > { %2748 = vst [vmem:[#allocation22_spill] sm:$0xff] %v2586_v32 }
 0x10b   : > { %v632_v44 = vpop.f32.mrf.mxu2  ;;  %v576_v59 = vpop.f32.mrf.mxu0 }
 0x10c   : > { %v2589_v46 = vadd.f32 %v632_v44, %v2560_v53  ;;  %v661_v57 = vpop.f32.mrf.mxu3  ;;  %v2595_v6 = vadd.f32 %v576_v59, %v2546_v36  ;;  %v605_v12 = vpop.f32.mrf.mxu1 }
 0x10d   : > { %v2592_v63 = vadd.f32 %v661_v57, %v2562_v55  ;;  %v2598_v17 = vadd.f32 %v605_v12, %v2550_v40 }
 0x10e   : > { %2749 = vst [vmem:[#allocation23_spill] sm:$0xff] %v2589_v46 }
 0x10f   : > { %2750 = vst [vmem:[#allocation24_spill] sm:$0xff] %v2592_v63 }
 0x110   : > { %2751 = vst [vmem:[#allocation25_spill] sm:$0xff] %v2595_v6 }
 0x111   : > { %2752 = vst [vmem:[#allocation26_spill] sm:$0xff] %v2598_v17 }
 0x113   : > { %v634_v18 = vpop.f32.mrf.mxu2  ;;  %v579_v20 = vpop.f32.mrf.mxu0 }
 0x114   : > { %v2601_v24 = vadd.f32 %v634_v18, %v2560_v53  ;;  %v663_v32 = vpop.f32.mrf.mxu3  ;;  %v2607_v46 = vadd.f32 %v579_v20, %v2546_v36  ;;  %v608_v57 = vpop.f32.mrf.mxu1 }
 0x115   : > { %v2604_v44 = vadd.f32 %v663_v32, %v2562_v55  ;;  %v2610_v59 = vadd.f32 %v608_v57, %v2550_v40 }
 0x116   : > { %2753 = vst [vmem:[#allocation27_spill] sm:$0xff] %v2601_v24 }
 0x117   : > { %2754 = vst [vmem:[#allocation28_spill] sm:$0xff] %v2604_v44 }
 0x118   : > { %2755 = vst [vmem:[#allocation29_spill] sm:$0xff] %v2607_v46  ;;  %v565_v46 = vadd.f32 %v564_v25, %v2546_v36  ;;  %v623_v25 = vadd.f32 %v2535_v28, %v2560_v53 }
 0x119   : > { %2756 = vst [vmem:[#allocation30_spill] sm:$0xff] %v2610_v59  ;;  %v594_v59 = vadd.f32 %v593_v26, %v2550_v40  ;;  %v567_v26 = vadd.f32 %v2539_v30, %v2546_v36 }
 0x11b   : > { %v637_v63 = vpop.f32.mrf.mxu2  ;;  %v581_v6 = vpop.f32.mrf.mxu0 }
 0x11c   : > { %v2613_v12 = vadd.f32 %v637_v63, %v2560_v53  ;;  %v666_v17 = vpop.f32.mrf.mxu3  ;;  %v2619_v24 = vadd.f32 %v581_v6, %v2546_v36  ;;  %v610_v32 = vpop.f32.mrf.mxu1 }
 0x11d   : > { %v2616_v18 = vadd.f32 %v666_v17, %v2562_v55  ;;  %v2622_v20 = vadd.f32 %v610_v32, %v2550_v40 }
 0x11e   : > { %2757 = vst [vmem:[#allocation31_spill] sm:$0xff] %v2613_v12 }
 0x11f   : > { %2758 = vst [vmem:[#allocation32_spill] sm:$0xff] %v2616_v18 }
 0x120   : > { %2759 = vst [vmem:[#allocation33_spill] sm:$0xff] %v2619_v24 }
 0x123   : > { %v639_v57 = vpop.f32.mrf.mxu2  ;;  %v920_v44 = vpop.f32.mrf.mxu0 }
 0x124   : > { %v2627_v63 = vadd.f32 %v639_v57, %v2560_v53  ;;  %v668_v12 = vpop.f32.mrf.mxu3  ;;  %v967_v18 = vadd.f32 %v920_v44, %v565_v46  ;;  %v934_v6 = vpop.f32.mrf.mxu1  ;;  %v596_v57 = vadd.f32 %v2541_v31, %v2550_v40  ;;  %v625_v31 = vadd.f32 %v2548_v37, %v2560_v53 }
 0x125   : > { %v2630_v17 = vadd.f32 %v668_v12, %v2562_v55  ;;  %v968_v24 = vadd.f32 %v934_v6, %v594_v59 }
 0x126   : > { %2760 = vst [vmem:[#allocation34_spill] sm:$0xff] %v2627_v63  ;;  %v975_v19 = vmul.f32 0.5, %v967_v18 }
 0x127   : > { %2761 = vst [vmem:[#allocation35_spill] sm:$0xff] %v2630_v17  ;;  %v983_v13 = vmul.f32 0.5, %v968_v24 }
 0x128   : > { %1936 = vtanh.f32 %v975_v19  ;;  %v652_v19 = vadd.f32 %v2537_v29, %v2562_v55 }
 0x129   : > { %1938 = vtanh.f32 %v983_v13 }
 0x12b   : > { %v948_v32 = vpop.f32.mrf.mxu2  ;;  %v922_v17 = vpop.f32.mrf.mxu0 }
 0x12c   : > { %v969_v63 = vadd.f32 %v948_v32, %v623_v25  ;;  %v962_v12 = vpop.f32.mrf.mxu3  ;;  %v971_v46 = vadd.f32 %v922_v17, %v567_v26  ;;  %v936_v44 = vpop.f32.mrf.mxu1  ;;  %v705_v25 = vld [vmem:[#allocation4 + $0x8] sm:$0xff] }
 0x12d   : > { %v972_v59 = vadd.f32 %v936_v44, %v596_v57  ;;  %v970_v36 = vadd.f32 %v962_v12, %v652_v19 }
 0x12e   : > { %1940 = vtanh.f32 %v969_v63  ;;  %v1937_v24 = vpop.eup %1936  ;;  %v976_v28 = vmul.f32 0.5, %v971_v46  ;;  %v654_v63 = vadd.f32 %v2552_v41, %v2562_v55  ;;  %v706_v55 = vld [vmem:[#allocation4] sm:$0xff] }
 0x12f   : > { %v1939_v13 = vpop.eup %1938  ;;  %v979_v18 = vmul.f32 0.5, %v1937_v24  ;;  %v984_v6 = vmul.f32 0.5, %v972_v59  ;;  %v993_v59 = vmul.f32 0.5, %v970_v36 }
 0x130   : > { %v987_v30 = vmul.f32 0.5, %v1939_v13  ;;  %1942 = vtanh.f32 %v976_v28 }
 0x131   : > { %v981_v40 = vadd.f32 0.5, %v979_v18  ;;  %1944 = vtanh.f32 %v984_v6 }
 0x132   : > { %v989_v17 = vadd.f32 0.5, %v987_v30 }
 0x133   : > { %v950_v26 = vpop.f32.mrf.mxu2 }
 0x134   : > { %v1941_v32 = vpop.eup %1940  ;;  %v973_v29 = vadd.f32 %v950_v26, %v625_v31  ;;  %v964_v57 = vpop.f32.mrf.mxu3  ;;  %v1001_v46 = vmul.f32 %v989_v17, %v705_v25 }
 0x135   : > { %v1003_v44 = vmul.f32 %v1941_v32, %v981_v40  ;;  %v974_v24 = vadd.f32 %v964_v57, %v654_v63 }
 0x136   : > { %1946 = vtanh.f32 %v973_v29  ;;  %v1943_v53 = vpop.eup %1942 }
 0x137   : > { %v2644_v12 = vadd.f32 %v1003_v44, %v1001_v46  ;;  %v994_v37 = vmul.f32 0.5, %v974_v24  ;;  %v1945_v19 = vpop.eup %1944  ;;  %1948 = vtanh.f32 %v993_v59  ;;  %v980_v28 = vmul.f32 0.5, %v1943_v53 }
 0x138   : > { %v988_v13 = vmul.f32 0.5, %v1945_v19 }
 0x139   : > { %1950 = vtanh.f32 %v994_v37  ;;  %v982_v41 = vadd.f32 0.5, %v980_v28 }
 0x13a   : > { %v990_v6 = vadd.f32 0.5, %v988_v13  ;;  %1952 = vtanh.f32 %v2644_v12 }
 0x13c   : > { %v1947_v18 = vpop.eup %1946  ;;  %v1002_v31 = vmul.f32 %v990_v6, %v706_v55 }
 0x13d   : > { %v1004_v30 = vmul.f32 %v1947_v18, %v982_v41  ;;  %v1949_v25 = vpop.eup %1948 }
 0x13e   : > { %v997_v63 = vmul.f32 0.5, %v1949_v25 }
 0x13f   : > { %v1951_v40 = vpop.eup %1950  ;;  %v2647_v36 = vadd.f32 %v1004_v30, %v1002_v31 }
 0x140   : > { %v998_v17 = vmul.f32 0.5, %v1951_v40  ;;  %v1953_v26 = vpop.eup %1952  ;;  %v999_v32 = vadd.f32 0.5, %v997_v63 }
 0x141   : > { %1954 = vtanh.f32 %v2647_v36 }
 0x142   : > { %v1000_v29 = vadd.f32 0.5, %v998_v17  ;;  %v1009_v46 = vmul.f32 %v1953_v26, %v999_v32  ;;  %v2764_v32 = vld [vmem:[#allocation21_spill] sm:$0xff] }
 0x147   : > { %v1955_v57 = vpop.eup %1954 }
 0x148   : > { %v1010_v44 = vmul.f32 %v1955_v57, %v1000_v29  ;;  %v2765_v57 = vld [vmem:[#allocation22_spill] sm:$0xff] }
 0x14a   : > { %v1022_v59 = vpack.c.bf16 %v1010_v44, %v1009_v46 }
 0x14c   : > { %1031 = vmatmul.bf16.vlgmr.msra.gmra.mxu0 %v1022_v59  ;;  %1045 = vmatmul.bf16.vlgmr.msra.gmra.mxu1 %v1022_v59 }
 0x14d   : > { %1059 = vmatmul.bf16.vlgmr.msra.gmra.mxu2 %v1022_v59  ;;  %1073 = vmatmul.bf16.vlgmr.msra.gmra.mxu3 %v1022_v59 }
 0x14e   : > { %1247 = vmatpush.bf16.msra.mxu0 %v2372_v38  ;;  %1261 = vmatpush.bf16.msra.mxu1 %v2374_v42 }
 0x14f   : > { %1275 = vmatpush.bf16.msra.mxu2 %v2376_v48  ;;  %1289 = vmatpush.bf16.msra.mxu3 %v2379_v49 }
 0x152   : > { %1248 = vmatpush.bf16.msra.mxu0 %v2381_v50  ;;  %1262 = vmatpush.bf16.msra.mxu1 %v2384_v54 }
 0x153   : > { %1276 = vmatpush.bf16.msra.mxu2 %v2387_v60  ;;  %1290 = vmatpush.bf16.msra.mxu3 %v2391_v61 }
 0x156   : > { %1249 = vmatpush.bf16.msra.mxu0 %v2393_v62  ;;  %1263 = vmatpush.bf16.msra.mxu1 %v2396_v2 }
 0x157   : > { %1277 = vmatpush.bf16.msra.mxu2 %v2399_v8  ;;  %1291 = vmatpush.bf16.msra.mxu3 %v2403_v9 }
 0x15a   : > { %1250 = vmatpush.bf16.msra.mxu0 %v2405_v10  ;;  %1264 = vmatpush.bf16.msra.mxu1 %v2408_v14 }
 0x15b   : > { %1278 = vmatpush.bf16.msra.mxu2 %v2412_v21  ;;  %1292 = vmatpush.bf16.msra.mxu3 %v2416_v22 }
 0x15e   : > { %1251 = vmatpush.bf16.msra.mxu0 %v2418_v23  ;;  %1265 = vmatpush.bf16.msra.mxu1 %v2421_v27 }
 0x15f   : > { %1279 = vmatpush.bf16.msra.mxu2 %v2424_v33  ;;  %1293 = vmatpush.bf16.msra.mxu3 %v2428_v34 }
 0x162   : > { %1252 = vmatpush.bf16.msra.mxu0 %v2430_v35  ;;  %1266 = vmatpush.bf16.msra.mxu1 %v2433_v39 }
 0x163   : > { %1280 = vmatpush.bf16.msra.mxu2 %v2436_v43  ;;  %1294 = vmatpush.bf16.msra.mxu3 %v2440_v47 }
 0x166   : > { %1253 = vmatpush.bf16.msra.mxu0 %v2442_v51  ;;  %1267 = vmatpush.bf16.msra.mxu1 %v2445_v56 }
 0x167   : > { %1281 = vmatpush.bf16.msra.mxu2 %v2448_v3  ;;  %1295 = vmatpush.bf16.msra.mxu3 %v2452_v4  ;;  %v2762_v3 = vld [vmem:[#allocation19_spill] sm:$0xff] }
 0x16a   : > { %1254 = vmatpush.bf16.msra.mxu0 %v2454_v5  ;;  %1268 = vmatpush.bf16.msra.mxu1 %v2457_v11  ;;  %v2763_v5 = vld [vmem:[#allocation20_spill] sm:$0xff] }
 0x16b   : > { %1282 = vmatpush.bf16.msra.mxu2 %v2460_v15  ;;  %1296 = vmatpush.bf16.msra.mxu3 %v2464_v16 }
 0x1c9   : > { %v1032_v38 = vpop.f32.mrf.mxu0  ;;  %v1046_v42 = vpop.f32.mrf.mxu1 }
 0x1ca   : > { %v1079_v48 = vadd.f32 %v1032_v38, %v2555_v45  ;;  %v1080_v49 = vadd.f32 %v1046_v42, %v2558_v52 }
 0x1cc   : > { %v1087_v50 = vmul.f32 0.5, %v1079_v48  ;;  %v1095_v54 = vmul.f32 0.5, %v1080_v49  ;;  %v2766_v48 = vld [vmem:[#allocation23_spill] sm:$0xff] }
 0x1ce   : > { %1956 = vtanh.f32 %v1087_v50 }
 0x1cf   : > { %1958 = vtanh.f32 %v1095_v54 }
 0x1d0   : > { %v1060_v60 = vpop.f32.mrf.mxu2  ;;  %v1074_v61 = vpop.f32.mrf.mxu3 }
 0x1d1   : > { %v1081_v62 = vadd.f32 %v1060_v60, %v2565_v58  ;;  %v1034_v2 = vpop.f32.mrf.mxu0  ;;  %v1048_v8 = vpop.f32.mrf.mxu1  ;;  %v1082_v33 = vadd.f32 %v1074_v61, %v2568_v0  ;;  %v2767_v60 = vld [vmem:[#allocation25_spill] sm:$0xff] }
 0x1d2   : > { %v1083_v9 = vadd.f32 %v1034_v2, %v2571_v1  ;;  %v1084_v10 = vadd.f32 %v1048_v8, %v2574_v7 }
 0x1d3   : > { %1960 = vtanh.f32 %v1081_v62  ;;  %v1105_v56 = vmul.f32 0.5, %v1082_v33  ;;  %v2768_v62 = vld [vmem:[#allocation26_spill] sm:$0xff] }
 0x1d4   : > { %v1957_v14 = vpop.eup %1956  ;;  %v1088_v21 = vmul.f32 0.5, %v1083_v9  ;;  %v1096_v22 = vmul.f32 0.5, %v1084_v10 }
 0x1d5   : > { %v1959_v23 = vpop.eup %1958  ;;  %v1091_v27 = vmul.f32 0.5, %v1957_v14 }
 0x1d6   : > { %v1099_v34 = vmul.f32 0.5, %v1959_v23  ;;  %1962 = vtanh.f32 %v1088_v21 }
 0x1d7   : > { %v1093_v35 = vadd.f32 0.5, %v1091_v27  ;;  %1964 = vtanh.f32 %v1096_v22  ;;  %v2769_v22 = vld [vmem:[#allocation24_spill] sm:$0xff] }
 0x1d8   : > { %v1101_v39 = vadd.f32 0.5, %v1099_v34  ;;  %v1062_v43 = vpop.f32.mrf.mxu2  ;;  %v1076_v47 = vpop.f32.mrf.mxu3 }
 0x1d9   : > { %v1961_v51 = vpop.eup %1960  ;;  %v1085_v4 = vadd.f32 %v1062_v43, %v2762_v3  ;;  %v1086_v11 = vadd.f32 %v1076_v47, %v2763_v5  ;;  %v2771_v3 = vld [vmem:[#allocation28_spill] sm:$0xff] }
 0x1da   : > { %v1113_v15 = vmul.f32 %v1101_v39, %v2644_v12  ;;  %v1115_v16 = vmul.f32 %v1961_v51, %v1093_v35  ;;  %v2770_v51 = vld [vmem:[#allocation27_spill] sm:$0xff] }
 0x1db   : > { %1966 = vtanh.f32 %v1085_v4  ;;  %v1106_v45 = vmul.f32 0.5, %v1086_v11 }
 0x1dc   : > { %v1963_v52 = vpop.eup %1962  ;;  %v1117_v58 = vadd.f32 %v1115_v16, %v1113_v15  ;;  %1968 = vtanh.f32 %v1105_v56 }
 0x1dd   : > { %v1965_v0 = vpop.eup %1964  ;;  %v1092_v1 = vmul.f32 0.5, %v1963_v52  ;;  %1970 = vtanh.f32 %v1106_v45 }
 0x1de   : > { %v1100_v7 = vmul.f32 0.5, %v1965_v0  ;;  %1972 = vtanh.f32 %v1117_v58 }
 0x1df   : > { %v1094_v24 = vadd.f32 0.5, %v1092_v1 }
 0x1e0   : > { %v1102_v37 = vadd.f32 0.5, %v1100_v7 }
 0x1e1   : > { %v1967_v53 = vpop.eup %1966 }
 0x1e2   : > { %v1114_v19 = vmul.f32 %v1102_v37, %v2647_v36  ;;  %v1116_v28 = vmul.f32 %v1967_v53, %v1094_v24  ;;  %v1969_v13 = vpop.eup %1968 }
 0x1e3   : > { %v1971_v41 = vpop.eup %1970  ;;  %v1109_v55 = vmul.f32 0.5, %v1969_v13 }
 0x1e4   : > { %v1118_v12 = vadd.f32 %v1116_v28, %v1114_v19  ;;  %v1110_v18 = vmul.f32 0.5, %v1971_v41  ;;  %v1973_v6 = vpop.eup %1972 }
 0x1e5   : > { %v1111_v30 = vadd.f32 0.5, %v1109_v55 }
 0x1e6   : > { %1974 = vtanh.f32 %v1118_v12  ;;  %v1112_v31 = vadd.f32 0.5, %v1110_v18 }
 0x1e7   : > { %v1121_v40 = vmul.f32 %v1973_v6, %v1111_v30 }
 0x1ec   : > { %v1975_v25 = vpop.eup %1974 }
 0x1ed   : > { %v1122_v63 = vmul.f32 %v1975_v25, %v1112_v31 }
 0x1ef   : > { %v1134_v17 = vpack.c.bf16 %v1122_v63, %v1121_v40 }
 0x1f1   : > { %1143 = vmatmul.bf16.vlgmr.msrb.gmra.mxu0 %v1134_v17  ;;  %1157 = vmatmul.bf16.vlgmr.msrb.gmra.mxu1 %v1134_v17 }
 0x1f2   : > { %1171 = vmatmul.bf16.vlgmr.msrb.gmra.mxu2 %v1134_v17  ;;  %1185 = vmatmul.bf16.vlgmr.msrb.gmra.mxu3 %v1134_v17 }
 0x26e   : > { %v1144_v36 = vpop.f32.mrf.mxu0  ;;  %v1158_v26 = vpop.f32.mrf.mxu1 }
 0x26f   : > { %v1191_v29 = vadd.f32 %v1144_v36, %v2764_v32  ;;  %v1192_v46 = vadd.f32 %v1158_v26, %v2765_v57  ;;  %v2772_v36 = vld [vmem:[#allocation29_spill] sm:$0xff]  ;;  %v2773_v32 = vld [vmem:[#allocation30_spill] sm:$0xff] }
 0x271   : > { %v1199_v44 = vmul.f32 0.5, %v1191_v29  ;;  %v1207_v59 = vmul.f32 0.5, %v1192_v46 }
 0x273   : > { %1976 = vtanh.f32 %v1199_v44 }
 0x274   : > { %1978 = vtanh.f32 %v1207_v59 }
 0x275   : > { %v1172_v38 = vpop.f32.mrf.mxu2  ;;  %v1186_v42 = vpop.f32.mrf.mxu3 }
 0x276   : > { %v1193_v49 = vadd.f32 %v1172_v38, %v2766_v48  ;;  %v1146_v50 = vpop.f32.mrf.mxu0  ;;  %v1160_v54 = vpop.f32.mrf.mxu1  ;;  %v1194_v23 = vadd.f32 %v1186_v42, %v2769_v22  ;;  %v2774_v38 = vld [vmem:[#allocation31_spill] sm:$0xff]  ;;  %v2775_v48 = vld [vmem:[#allocation32_spill] sm:$0xff] }
 0x277   : > { %v1195_v61 = vadd.f32 %v1146_v50, %v2767_v60  ;;  %v1196_v2 = vadd.f32 %v1160_v54, %v2768_v62  ;;  %v2776_v60 = vld [vmem:[#allocation33_spill] sm:$0xff] }
 0x278   : > { %1980 = vtanh.f32 %v1193_v49  ;;  %v1217_v47 = vmul.f32 0.5, %v1194_v23 }
 0x279   : > { %v1977_v8 = vpop.eup %1976  ;;  %v1200_v9 = vmul.f32 0.5, %v1195_v61  ;;  %v1208_v10 = vmul.f32 0.5, %v1196_v2 }
 0x27a   : > { %v1979_v14 = vpop.eup %1978  ;;  %v1203_v21 = vmul.f32 0.5, %v1977_v8 }
 0x27b   : > { %v1211_v27 = vmul.f32 0.5, %v1979_v14  ;;  %1982 = vtanh.f32 %v1200_v9 }
 0x27c   : > { %v1205_v33 = vadd.f32 0.5, %v1203_v21  ;;  %1984 = vtanh.f32 %v1208_v10 }
 0x27d   : > { %v1213_v34 = vadd.f32 0.5, %v1211_v27  ;;  %v1174_v35 = vpop.f32.mrf.mxu2  ;;  %v1188_v39 = vpop.f32.mrf.mxu3 }
 0x27e   : > { %v1981_v43 = vpop.eup %1980  ;;  %v1197_v56 = vadd.f32 %v1174_v35, %v2770_v51  ;;  %v1198_v4 = vadd.f32 %v1188_v39, %v2771_v3  ;;  %v2777_v39 = vld [vmem:[#allocation34_spill] sm:$0xff] }
 0x27f   : > { %v1225_v5 = vmul.f32 %v1213_v34, %v1117_v58  ;;  %v1227_v11 = vmul.f32 %v1981_v43, %v1205_v33 }
 0x280   : > { %1986 = vtanh.f32 %v1197_v56  ;;  %v1218_v15 = vmul.f32 0.5, %v1198_v4 }
 0x281   : > { %v1983_v16 = vpop.eup %1982  ;;  %v2700_v45 = vadd.f32 %v1227_v11, %v1225_v5  ;;  %1988 = vtanh.f32 %v1217_v47  ;;  %v2778_v47 = vld [vmem:[#allocation35_spill] sm:$0xff] }
 0x282   : > { %v1985_v52 = vpop.eup %1984  ;;  %v1204_v0 = vmul.f32 0.5, %v1983_v16  ;;  %1990 = vtanh.f32 %v1218_v15 }
 0x283   : > { %v1212_v1 = vmul.f32 0.5, %v1985_v52  ;;  %1992 = vtanh.f32 %v2700_v45 }
 0x284   : > { %v1206_v7 = vadd.f32 0.5, %v1204_v0 }
 0x285   : > { %v1214_v24 = vadd.f32 0.5, %v1212_v1 }
 0x286   : > { %v1987_v37 = vpop.eup %1986 }
 0x287   : > { %v1226_v53 = vmul.f32 %v1214_v24, %v1118_v12  ;;  %v1228_v19 = vmul.f32 %v1987_v37, %v1206_v7  ;;  %v1989_v28 = vpop.eup %1988 }
 0x288   : > { %v1991_v13 = vpop.eup %1990  ;;  %v1221_v41 = vmul.f32 0.5, %v1989_v28 }
 0x289   : > { %v2703_v58 = vadd.f32 %v1228_v19, %v1226_v53  ;;  %v1222_v55 = vmul.f32 0.5, %v1991_v13  ;;  %v1993_v18 = vpop.eup %1992 }
 0x28a   : > { %v1223_v6 = vadd.f32 0.5, %v1221_v41 }
 0x28b   : > { %1994 = vtanh.f32 %v2703_v58  ;;  %v1224_v30 = vadd.f32 0.5, %v1222_v55 }
 0x28c   : > { %v1233_v25 = vmul.f32 %v1993_v18, %v1223_v6 }
 0x291   : > { %v1995_v31 = vpop.eup %1994 }
 0x292   : > { %v1234_v40 = vmul.f32 %v1995_v31, %v1224_v30 }
 0x294   : > { %v1246_v63 = vpack.c.bf16 %v1234_v40, %v1233_v25 }
 0x296   : > { %1255 = vmatmul.bf16.vlgmr.msra.gmra.mxu0 %v1246_v63  ;;  %1269 = vmatmul.bf16.vlgmr.msra.gmra.mxu1 %v1246_v63 }
 0x297   : > { %1283 = vmatmul.bf16.vlgmr.msra.gmra.mxu2 %v1246_v63  ;;  %1297 = vmatmul.bf16.vlgmr.msra.gmra.mxu3 %v1246_v63 }
 0x313   : > { %v1256_v12 = vpop.f32.mrf.mxu0  ;;  %v1270_v17 = vpop.f32.mrf.mxu1 }
 0x314   : > { %v1303_v26 = vadd.f32 %v1256_v12, %v2772_v36  ;;  %v1304_v29 = vadd.f32 %v1270_v17, %v2773_v32 }
 0x316   : > { %v1311_v57 = vmul.f32 0.5, %v1303_v26  ;;  %v1319_v46 = vmul.f32 0.5, %v1304_v29 }
 0x318   : > { %1996 = vtanh.f32 %v1311_v57 }
 0x319   : > { %1998 = vtanh.f32 %v1319_v46 }
 0x31a   : > { %v1284_v44 = vpop.f32.mrf.mxu2  ;;  %v1298_v59 = vpop.f32.mrf.mxu3 }
 0x31b   : > { %v1305_v42 = vadd.f32 %v1284_v44, %v2774_v38  ;;  %v1306_v49 = vadd.f32 %v1298_v59, %v2775_v48  ;;  %v1258_v50 = vpop.f32.mrf.mxu0  ;;  %v1272_v54 = vpop.f32.mrf.mxu1 }
 0x31c   : > { %v1307_v61 = vadd.f32 %v1258_v50, %v2776_v60  ;;  %v1308_v62 = vadd.f32 %v1272_v54, %v2622_v20 }
 0x31d   : > { %2000 = vtanh.f32 %v1305_v42  ;;  %v1329_v2 = vmul.f32 0.5, %v1306_v49 }
 0x31e   : > { %v1997_v8 = vpop.eup %1996  ;;  %v1312_v9 = vmul.f32 0.5, %v1307_v61  ;;  %v1320_v10 = vmul.f32 0.5, %v1308_v62 }
 0x31f   : > { %v1999_v14 = vpop.eup %1998  ;;  %v1315_v21 = vmul.f32 0.5, %v1997_v8  ;;  %2002 = vtanh.f32 %v1329_v2 }
 0x320   : > { %v1323_v22 = vmul.f32 0.5, %v1999_v14  ;;  %2004 = vtanh.f32 %v1312_v9 }
 0x321   : > { %v1317_v23 = vadd.f32 0.5, %v1315_v21  ;;  %2006 = vtanh.f32 %v1320_v10 }
 0x322   : > { %v1325_v27 = vadd.f32 0.5, %v1323_v22  ;;  %v1286_v33 = vpop.f32.mrf.mxu2  ;;  %v1300_v34 = vpop.f32.mrf.mxu3 }
 0x323   : > { %v2001_v35 = vpop.eup %2000  ;;  %v1309_v43 = vadd.f32 %v1286_v33, %v2777_v39  ;;  %v1310_v20 = vadd.f32 %v1300_v34, %v2778_v47 }
 0x324   : > { %v1337_v51 = vmul.f32 %v1325_v27, %v2700_v45  ;;  %v1339_v56 = vmul.f32 %v2001_v35, %v1317_v23 }
 0x325   : > { %v2003_v3 = vpop.eup %2002  ;;  %2008 = vtanh.f32 %v1309_v43  ;;  %v1330_v4 = vmul.f32 0.5, %v1310_v20 }
 0x326   : > { %v2005_v5 = vpop.eup %2004  ;;  %v1341_v11 = vadd.f32 %v1339_v56, %v1337_v51  ;;  %v1333_v0 = vmul.f32 0.5, %v2003_v3 }
 0x327   : > { %v2007_v15 = vpop.eup %2006  ;;  %v1316_v16 = vmul.f32 0.5, %v2005_v5  ;;  %2010 = vtanh.f32 %v1330_v4 }
 0x328   : > { %2012 = vtanh.f32 %v1341_v11  ;;  %1349 = vst [vmem:[#allocation4 + $0x8] sm:$0xff] %v1341_v11  ;;  %v1324_v52 = vmul.f32 0.5, %v2007_v15  ;;  %v1335_v19 = vadd.f32 0.5, %v1333_v0 }
 0x329   : > { %v1318_v1 = vadd.f32 0.5, %v1316_v16 }
 0x32a   : > { %v1326_v7 = vadd.f32 0.5, %v1324_v52 }
 0x32b   : > { %v2009_v24 = vpop.eup %2008 }
 0x32c   : > { %v1338_v37 = vmul.f32 %v1326_v7, %v2703_v58  ;;  %v1340_v53 = vmul.f32 %v2009_v24, %v1318_v1 }
 0x32d   : > { %v2011_v45 = vpop.eup %2010 }
 0x32e   : > { %v2013_v28 = vpop.eup %2012  ;;  %v1342_v13 = vadd.f32 %v1340_v53, %v1338_v37  ;;  %v1334_v55 = vmul.f32 0.5, %v2011_v45 }
 0x32f   : > { %v1345_v41 = vmul.f32 %v2013_v28, %v1335_v19 }
 0x330   : > { %2014 = vtanh.f32 %v1342_v13  ;;  %1350 = vst [vmem:[#allocation4] sm:$0xff] %v1342_v13  ;;  %v1336_v18 = vadd.f32 0.5, %v1334_v55 }
 0x331   : > { %1347 = vst [vmem:[#allocation3] sm:$0xff] %v1345_v41 }
 0x335   : > { %1354 = sbr.rel (%p1777_p1) target bundleno = 1105 (0x451), region = 68 }
 0x336   : > { %v2015_v6 = vpop.eup %2014 }
 0x337   : > { %v1346_v30 = vmul.f32 %v2015_v6, %v1336_v18 }
 0x339   : > { %1348 = vst [vmem:[#allocation3 + $0x8] sm:$0xff] %v1346_v30 }
 0x33a   : > { %v1370_v31 = vld [vmem:[#allocation12 + $0x78] sm:$0xff]  ;;  %v1369_v25 = vld [vmem:[#allocation12 + $0x70] sm:$0xff]  ;;  %v1368_v58 = vld [vmem:[#allocation12 + $0x68] sm:$0xff]  ;;  %v1395_v49 = vstv %s1394_s16 }
 0x33b   : > { %1371 = vmatpush.msra.mxu0 %v1370_v31  ;;  %v1367_v40 = vld [vmem:[#allocation12 + $0x60] sm:$0xff]  ;;  %v1366_v63 = vld [vmem:[#allocation12 + $0x58] sm:$0xff]  ;;  %v1365_v12 = vld [vmem:[#allocation12 + $0x50] sm:$0xff] }
 0x33c   : > { %v1364_v17 = vld [vmem:[#allocation12 + $0x48] sm:$0xff]  ;;  %v1363_v36 = vld [vmem:[#allocation12 + $0x40] sm:$0xff]  ;;  %v1362_v26 = vld [vmem:[#allocation12 + $0x38] sm:$0xff] }
 0x33d   : > { %1372 = vmatpush.msra.mxu0 %v1369_v25  ;;  %v1361_v32 = vld [vmem:[#allocation12 + $0x30] sm:$0xff]  ;;  %v1360_v29 = vld [vmem:[#allocation12 + $0x28] sm:$0xff]  ;;  %v1359_v57 = vld [vmem:[#allocation12 + $0x20] sm:$0xff] }
 0x33e   : > { %v1358_v46 = vld [vmem:[#allocation12 + $0x18] sm:$0xff]  ;;  %v1357_v44 = vld [vmem:[#allocation12 + $0x10] sm:$0xff]  ;;  %v1356_v59 = vld [vmem:[#allocation12 + $0x8] sm:$0xff] }
 0x33f   : > { %1373 = vmatpush.msra.mxu0 %v1368_v58  ;;  %v1355_v38 = vld [vmem:[#allocation12] sm:$0xff] }
 0x341   : > { %1374 = vmatpush.msra.mxu0 %v1367_v40 }
 0x343   : > { %1375 = vmatpush.msra.mxu0 %v1366_v63 }
 0x345   : > { %1376 = vmatpush.msra.mxu0 %v1365_v12 }
 0x347   : > { %1377 = vmatpush.msra.mxu0 %v1364_v17 }
 0x349   : > { %1378 = vmatpush.msra.mxu0 %v1363_v36 }
 0x34b   : > { %1379 = vmatpush.msra.mxu0 %v1362_v26 }
 0x34d   : > { %1380 = vmatpush.msra.mxu0 %v1361_v32 }
 0x34f   : > { %1381 = vmatpush.msra.mxu0 %v1360_v29 }
 0x351   : > { %1382 = vmatpush.msra.mxu0 %v1359_v57 }
 0x353   : > { %1383 = vmatpush.msra.mxu0 %v1358_v46 }
 0x355   : > { %1384 = vmatpush.msra.mxu0 %v1357_v44 }
 0x357   : > { %1385 = vmatpush.msra.mxu0 %v1356_v59 }
 0x359   : > { %1386 = vmatpush.msra.mxu0 %v1355_v38 }
 0x35a   : > { %1387 = vmatmul.f32.vlgmr.msra.gmra.mxu0 %v1345_v41 }
 0x3d7   : > { %v1388_v42 = vpop.f32.mrf.mxu0 }
 0x3d8   : > { %v1391_v48 = vmul.f32 %v1388_v42, %v1346_v30 }
 0x3da   : > { %1392 = vadd.xlane.f32.xlu0 %v1391_v48 }
 0x44d   : > { %v1393_v50 = vpop.xlane.xlu0 %1392 }
 0x44e   : > { %v1396_v54 = vadd.f32 %v1395_v49, %v1393_v50 }
 0x450   : > { %1397 = vst [vmem:[#allocation14] sm:$0xff] %v1396_v54 }
 0x451 PF: > { %p1891_p4 = scmp.eq.s32.totalorder %s2280_s5, 1  ;;  %s2222_s17 = smov [#allocation14]  }
 0x452   : > { %s1404_s18 = sshll.u32 %s2222_s17, 4  ;;  %s1406_s21 = sshll.u32 %s2740_s6, 4  ;;  %s1405_s18 = int_to_ptr.vmem [resolvable:$true] %s1404_s18  ;;  %s1407_s21 = int_to_ptr.hbm [resolvable:$true] %s1406_s21 }
 0x453   : > { %1867 = dma.vmem_to_hbm [thread:$0]  (%p1891_p4), %s1405_s18, 128, %s1407_s21, [#allocation8]  }
 0x454   : > { %2193 = dma.done.wait (%p1891_p4), [#allocation8], 128  }
 0x455   : > { %2195 = vsyncadd (%p1891_p4), [#allocation8], 4294967168 }
 0x456 PF: > { %p20_p5 = scmp.ge.s32.totalorder %s2321_s29, 4   ;;  %s2779_s23 = smov %s2202_s24 }
 0x457   : > { %s2780_s24 = smov %s2206_s25  ;;  %s2781_s25 = smov %s2331_s9 }
 0x458   : > { %s2782_s26 = smov %s2321_s29  ;;  %22 = sbr.rel (!%p20_p5) target bundleno = 8 (0x8), region = 105 }
 0x45d   :  { %1420 = vsyncpa [#allocation7], 1 }
 0x45e   :  { %1422 = vsyncpa [#allocation7 + $0x1], 1 }
 0x45f   :  { %1423 = vsyncpa [#allocation10], 1 }
 0x460   :  { %1424 = vsyncpa [#allocation13], 1 }
 0x461   :  { %1425 = vsyncpa [#allocation8], 1 }
 0x462   :  { %1427 = vsyncpa [#allocation8 + $0x1], 1 }

</bundles_post_ra>
